<compile_context>
chip_gen: v7x
topology: tpu7x:2x2x1
jax: 0.10.0
libtpu: 0.0.40
codegen_flags: <defaults>
</compile_context>

<pallas_src>
import functools

import jax
import jax.numpy as jnp
from jax.experimental import pallas as pl
from jax.experimental.pallas import tpu as pltpu

# ----------------------------- configuration --------------------------------
# Structure mirrors vit_b_16 but at small, runnable sizes.
IMG = 32            # image spatial size (ViT-B/16 uses 224)
PATCH = 16          # patch size (same as ViT-B/16)
C_IN = 3            # RGB
NUM_PATCHES = (IMG // PATCH) ** 2      # 4
SEQ = NUM_PATCHES + 1                  # 5 real tokens (patches + class token)
SEQ_PAD = ((SEQ + 7) // 8) * 8         # 8: per-sample rows padded to a sublane tile
DIM = 64            # hidden dim (ViT-B uses 768)
HEADS = 4           # attention heads (ViT-B uses 12)
HEAD_DIM = DIM // HEADS                # 16
MLP = 128           # MLP hidden dim (ViT-B uses 3072)
LAYERS = 2          # encoder layers (ViT-B uses 12)
NUM_CLASSES = 10
NUM_CLASSES_PAD = 128                  # lane-dense padded head output
CPP = C_IN * PATCH * PATCH             # 768 (flattened patch length)
EPS = 1e-6          # torchvision ViT LayerNorm eps

# In-kernel token order per sample: [patch_0 .. patch_{NP-1}, cls, cls, cls, cls]
# (rows >= NUM_PATCHES all carry the class-token embedding; only the row at
# index NUM_PATCHES is treated as "the" class token, the rest are inert pad
# rows masked out of the attention keys).  Attention is permutation-invariant,
# so this matches torchvision's [cls, patches...] ordering exactly.


# ------------------------------ kernel helpers -------------------------------
def _layernorm(v, g, b):
    """LayerNorm over the last (feature) axis.  g, b are (1, D), f32 math."""
    mu = jnp.mean(v, axis=-1, keepdims=True)
    var = jnp.mean(jnp.square(v - mu), axis=-1, keepdims=True)
    return (v - mu) * jax.lax.rsqrt(var + EPS) * g + b


def _gelu_tanh(x):
    # TODO(synk): torchvision ViT uses exact (erf) GELU; tanh approximation used
    # since erf lowering is not guaranteed in Mosaic.
    return 0.5 * x * (1.0 + jnp.tanh(0.7978845608028654 * (x + 0.044715 * x * x * x)))


# --------------------------------- fused kernel ------------------------------
def vit_fused_kernel(
    patches_ref,                 # (bb, NUM_PATCHES, CPP) bf16
    pw_ref,                      # (CPP, DIM)             bf16  patch-embed weight
    eb8_ref,                     # (SEQ_PAD, DIM)  f32  rows<NP: conv_b+pos[1:]; rows>=NP: cls+pos[0]
    ln1g_ref, ln1b_ref,          # (LAYERS, 1, DIM) f32
    wqkv_ref,                    # (LAYERS, DIM, 3*DIM)   bf16 (q columns pre-scaled)
    bqkv_ref,                    # (LAYERS, 1, 3*DIM)     f32  (q pre-scaled), lane-dense
    wo_ref,                      # (LAYERS, DIM, DIM)     bf16
    bo_ref,                      # (LAYERS, 1, DIM)       f32
    ln2g_ref, ln2b_ref,          # (LAYERS, 1, DIM) f32
    w1_ref,                      # (LAYERS, DIM, MLP)     bf16
    b1_ref,                      # (LAYERS, 1, MLP)       f32
    w2_ref,                      # (LAYERS, MLP, DIM)     bf16
    b2_ref,                      # (LAYERS, 1, DIM)       f32
    lnfg_ref, lnfb_ref,          # (1, DIM) f32
    hw_ref,                      # (DIM, NUM_CLASSES_PAD) bf16 (zero-padded cols)
    hb_ref,                      # (1, NUM_CLASSES_PAD)   f32  (zero-padded cols)
    o_ref,                       # (bb, NUM_CLASSES_PAD)  f32
    pbuf_ref,                    # scratch (bb, SEQ_PAD, CPP) bf16
):
    bb = patches_ref.shape[0]
    tok = bb * SEQ_PAD

    # ---- patch embedding: one (bb*SEQ_PAD, CPP) x (CPP, DIM) matmul ----------
    # Rows >= NUM_PATCHES of each sample slab are zero so after the fused
    # embedding-bias add they become the class-token row(s).
    pbuf_ref[...] = jnp.zeros(pbuf_ref.shape, pbuf_ref.dtype)
    pbuf_ref[:, 0:NUM_PATCHES, :] = patches_ref[...]
    pe = jnp.dot(pbuf_ref[...].reshape(tok, CPP), pw_ref[...],
                 preferred_element_type=jnp.float32)                     # (tok, DIM)
    x = (pe.reshape(bb, SEQ_PAD, DIM) + eb8_ref[...][None]).reshape(tok, DIM)

    # Keys beyond the real sequence (pad rows / duplicate cls copies) are masked.
    kmask = jax.lax.broadcasted_iota(jnp.int32, (1, 1, SEQ_PAD), 2) < SEQ

    def split_heads(qkv, base):   # lane slice -> (HEADS*bb, SEQ_PAD, HEAD_DIM)
        parts = [qkv[:, base + i * HEAD_DIM: base + (i + 1) * HEAD_DIM]
                 for i in range(HEADS)]
        return jnp.stack(parts).reshape(HEADS * bb, SEQ_PAD, HEAD_DIM)

    for l in range(LAYERS):                      # static unroll over layers
        # ---- pre-norm multi-head self-attention (fused lane-dense QKV) ----
        h = _layernorm(x, ln1g_ref[l], ln1b_ref[l])                      # f32
        qkv = jnp.dot(h.astype(jnp.bfloat16), wqkv_ref[l],
                      preferred_element_type=jnp.float32) + bqkv_ref[l]  # (tok, 3*DIM)

        q = split_heads(qkv, 0)                  # pre-scaled by 1/sqrt(hd)
        k = split_heads(qkv, DIM)
        v = split_heads(qkv, 2 * DIM)

        s = jnp.einsum("bqk,bmk->bqm", q, k,
                       preferred_element_type=jnp.float32)               # (H*bb, S, S)
        s = jnp.where(kmask, s, -1e30)           # mask padded key slots
        s = s - jnp.max(s, axis=-1, keepdims=True)
        p = jnp.exp(s)
        p = p * pl.reciprocal(jnp.sum(p, axis=-1, keepdims=True), approx=True)
        attn = jnp.einsum("bqm,bmk->bqk", p, v,
                          preferred_element_type=jnp.float32)            # (H*bb, S, hd)

        # merge heads -> (tok, DIM), then one lane-dense output projection
        attn = attn.reshape(HEADS, tok, HEAD_DIM)
        attn = jnp.concatenate([attn[i] for i in range(HEADS)], axis=-1)
        x = x + jnp.dot(attn.astype(jnp.bfloat16), wo_ref[l],
                        preferred_element_type=jnp.float32) + bo_ref[l]

        # ---- pre-norm MLP ----
        h2 = _layernorm(x, ln2g_ref[l], ln2b_ref[l])
        m1 = jnp.dot(h2.astype(jnp.bfloat16), w1_ref[l],
                     preferred_element_type=jnp.float32) + b1_ref[l]
        m1 = _gelu_tanh(m1)
        x = x + jnp.dot(m1.astype(jnp.bfloat16), w2_ref[l],
                        preferred_element_type=jnp.float32) + b2_ref[l]

    # ---- final LayerNorm on class token + (lane-padded) linear head ----
    # Gather every sample's cls row (row b*SEQ_PAD + NUM_PATCHES) with a one-hot
    # selection matmul (MXU slot; avoids unaligned sublane slicing).
    col = jax.lax.broadcasted_iota(jnp.int32, (bb, tok), 1)
    tgt = jax.lax.broadcasted_iota(jnp.int32, (bb, tok), 0) * SEQ_PAD + NUM_PATCHES
    sel = (col == tgt).astype(jnp.float32)                               # (bb, tok)
    cls_tok = jnp.dot(sel, x, preferred_element_type=jnp.float32)        # (bb, DIM)
    cls_tok = _layernorm(cls_tok, lnfg_ref[...], lnfb_ref[...])
    o_ref[...] = (jnp.dot(cls_tok.astype(jnp.bfloat16), hw_ref[...],
                          preferred_element_type=jnp.float32) + hb_ref[...])


# ------------------------------ pallas wrapper --------------------------------
def _full_spec(arr):
    nd = arr.ndim
    return pl.BlockSpec(arr.shape, lambda b, _nd=nd: (0,) * _nd)


def extract_patches(x):
    """NCHW -> (B, NUM_PATCHES, C*P*P): flattened 16x16 patches in (c, kh, kw)
    order (matches PyTorch's Conv2d(kernel=stride=16) patch embedding)."""
    bsz = x.shape[0]
    gh = IMG // PATCH
    p = x.reshape(bsz, C_IN, gh, PATCH, gh, PATCH)
    p = p.transpose(0, 2, 4, 1, 3, 5).reshape(bsz, NUM_PATCHES, CPP)
    return p


def vit_forward(prepped, x, block_b=8):
    bsz = x.shape[0]
    patches = extract_patches(x).astype(jnp.bfloat16)      # (B, NP, CPP)
    weights = prepped["weights"]

    # Batch blocking: bb samples fill the matmul M dimension per grid step.
    # (For v7x keep the number of blocks a multiple of 2 TensorCores when the
    # batch is large; at bsz <= block_b there is a single block.)
    bb = bsz if bsz <= block_b else block_b
    pad = (-bsz) % bb
    if pad:
        patches = jnp.concatenate(
            [patches, jnp.zeros((pad, NUM_PATCHES, CPP), patches.dtype)], axis=0)
    nblk = (bsz + pad) // bb

    out = pl.pallas_call(
        vit_fused_kernel,
        out_shape=jax.ShapeDtypeStruct((nblk * bb, NUM_CLASSES_PAD), jnp.float32),
        grid=(nblk,),
        in_specs=[pl.BlockSpec((bb, NUM_PATCHES, CPP), lambda b: (b, 0, 0))]
        + [_full_spec(w) for w in weights],
        out_specs=pl.BlockSpec((bb, NUM_CLASSES_PAD), lambda b: (b, 0)),
        scratch_shapes=[pltpu.VMEM((bb, SEQ_PAD, CPP), jnp.bfloat16)],
        compiler_params=pltpu.CompilerParams(dimension_semantics=("parallel",)),
    )(patches, *weights)
    return out[:bsz, :NUM_CLASSES]


# ------------------------------ parameter prep --------------------------------
def init_params(key):
    keys = jax.random.split(key, 4 + LAYERS)

    def nrm(k, shape, scale=0.02):
        return jax.random.normal(k, shape, jnp.float32) * scale

    params = {
        "patch_w": nrm(keys[0], (CPP, DIM)),
        "patch_b": jnp.zeros((1, DIM), jnp.float32),
        "cls_token": nrm(keys[1], (1, 1, DIM)),
        "pos_emb": nrm(keys[2], (1, SEQ, DIM)),
        "ln_g": jnp.ones((1, DIM), jnp.float32),
        "ln_b": jnp.zeros((1, DIM), jnp.float32),
        "head_w": nrm(keys[3], (DIM, NUM_CLASSES)),
        "head_b": jnp.zeros((1, NUM_CLASSES), jnp.float32),
    }
    layers = []
    for i in range(LAYERS):
        lk = jax.random.split(keys[4 + i], 4)
        layers.append((
            jnp.ones((1, DIM), jnp.float32), jnp.zeros((1, DIM), jnp.float32),   # ln1
            nrm(lk[0], (DIM, 3 * DIM)), jnp.zeros((1, 3 * DIM), jnp.float32),    # qkv
            nrm(lk[1], (DIM, DIM)), jnp.zeros((1, DIM), jnp.float32),            # out proj
            jnp.ones((1, DIM), jnp.float32), jnp.zeros((1, DIM), jnp.float32),   # ln2
            nrm(lk[2], (DIM, MLP)), jnp.zeros((1, MLP), jnp.float32),            # mlp fc1
            nrm(lk[3], (MLP, DIM)), jnp.zeros((1, DIM), jnp.float32),            # mlp fc2
        ))
    params["layers"] = layers
    return params


def prepare_params(p):
    """One-time restructuring: fused lane-dense QKV weights (attention scale
    folded into the Q columns), fused embedding bias laid out for the in-kernel
    [patches..., cls, pads] token order, lane-padded head, bf16 matmul weights."""
    bf16 = jnp.bfloat16
    scale = 1.0 / (HEAD_DIM ** 0.5)

    pos = p["pos_emb"][0]                                   # (SEQ, DIM)
    eb_patch = pos[1:] + p["patch_b"]                       # conv bias + pos[1:]
    eb_cls = pos[0:1] + p["cls_token"][0]                   # cls token + pos[0]
    eb8 = jnp.concatenate(
        [eb_patch, jnp.broadcast_to(eb_cls, (SEQ_PAD - NUM_PATCHES, DIM))], axis=0)

    # q | k | v column blocks; pre-scale the q block by 1/sqrt(head_dim).
    qcol = jnp.concatenate([jnp.full((DIM,), scale, jnp.float32),
                            jnp.ones((2 * DIM,), jnp.float32)])

    ln1g, ln1b, wqkv, bqkv, wo, bo = [], [], [], [], [], []
    ln2g, ln2b, w1, b1, w2, b2 = [], [], [], [], [], []
    for (g1, be1, wq, bq, wout, bout, g2, be2, wf1, bf1, wf2, bf2) in p["layers"]:
        ln1g.append(g1); ln1b.append(be1)
        wqkv.append(wq * qcol[None, :])          # (DIM, 3*DIM), lane-dense
        bqkv.append(bq * qcol[None, :])          # (1, 3*DIM),   lane-dense
        wo.append(wout); bo.append(bout)
        ln2g.append(g2); ln2b.append(be2)
        w1.append(wf1); b1.append(bf1); w2.append(wf2); b2.append(bf2)

    hw = jnp.zeros((DIM, NUM_CLASSES_PAD), jnp.float32).at[:, :NUM_CLASSES].set(p["head_w"])
    hb = jnp.zeros((1, NUM_CLASSES_PAD), jnp.float32).at[:, :NUM_CLASSES].set(p["head_b"])

    weights = (
        p["patch_w"].astype(bf16),
        eb8,
        jnp.stack(ln1g), jnp.stack(ln1b),
        jnp.stack(wqkv).astype(bf16), jnp.stack(bqkv),
        jnp.stack(wo).astype(bf16), jnp.stack(bo),
        jnp.stack(ln2g), jnp.stack(ln2b),
        jnp.stack(w1).astype(bf16), jnp.stack(b1),
        jnp.stack(w2).astype(bf16), jnp.stack(b2),
        p["ln_g"], p["ln_b"],
        hw.astype(bf16), hb,
    )
    return {"weights": weights}


# ----------------------------------- main --------------------------------------
if __name__ == "__main__":
    key = jax.random.PRNGKey(0)
    pkey, xkey = jax.random.split(key)
    params = init_params(pkey)
    prepped = prepare_params(params)
    x = jax.random.normal(xkey, (2, C_IN, IMG, IMG), jnp.float32)  # NCHW, like PyTorch

    logits = jax.jit(functools.partial(vit_forward, prepped))(x)
    logits = jax.block_until_ready(logits)
    assert logits.shape == (2, NUM_CLASSES)
    assert bool(jnp.all(jnp.isfinite(logits)))
    print("KERNEL_OK")
</pallas_src>

<mosaic_0001>
module attributes {stable_mosaic.version = 11 : i64} {
  func.func @vit_fused_kernel(%arg0: i32, %arg1: memref<2x4x768xbf16, #tpu.memory_space<vmem>>, %arg2: memref<768x64xbf16, #tpu.memory_space<vmem>>, %arg3: memref<8x64xf32, #tpu.memory_space<vmem>>, %arg4: memref<2x1x64xf32, #tpu.memory_space<vmem>>, %arg5: memref<2x1x64xf32, #tpu.memory_space<vmem>>, %arg6: memref<2x64x192xbf16, #tpu.memory_space<vmem>>, %arg7: memref<2x1x192xf32, #tpu.memory_space<vmem>>, %arg8: memref<2x64x64xbf16, #tpu.memory_space<vmem>>, %arg9: memref<2x1x64xf32, #tpu.memory_space<vmem>>, %arg10: memref<2x1x64xf32, #tpu.memory_space<vmem>>, %arg11: memref<2x1x64xf32, #tpu.memory_space<vmem>>, %arg12: memref<2x64x128xbf16, #tpu.memory_space<vmem>>, %arg13: memref<2x1x128xf32, #tpu.memory_space<vmem>>, %arg14: memref<2x128x64xbf16, #tpu.memory_space<vmem>>, %arg15: memref<2x1x64xf32, #tpu.memory_space<vmem>>, %arg16: memref<1x64xf32, #tpu.memory_space<vmem>>, %arg17: memref<1x64xf32, #tpu.memory_space<vmem>>, %arg18: memref<64x128xbf16, #tpu.memory_space<vmem>>, %arg19: memref<1x128xf32, #tpu.memory_space<vmem>>, %arg20: memref<2x128xf32, #tpu.memory_space<vmem>>, %arg21: memref<2x8x768xbf16, #tpu.memory_space<vmem>>) attributes {dimension_semantics = [#tpu.dimension_semantics<parallel>], iteration_bounds = array<i64: 1>, scalar_prefetch = 0 : i64, scratch_operands = 1 : i64, tpu.core_type = #tpu.core_type<tc>, window_params = [{transform_indices = @transform_0, window_bounds = array<i64: 2, 4, 768>}, {pipeline_mode = #tpu.pipeline_mode<synchronous>, transform_indices = @transform_1, window_bounds = array<i64: 768, 64>}, {pipeline_mode = #tpu.pipeline_mode<synchronous>, transform_indices = @transform_2, window_bounds = array<i64: 8, 64>}, {pipeline_mode = #tpu.pipeline_mode<synchronous>, transform_indices = @transform_3, window_bounds = array<i64: 2, 1, 64>}, {pipeline_mode = #tpu.pipeline_mode<synchronous>, transform_indices = @transform_4, window_bounds = array<i64: 2, 1, 64>}, {pipeline_mode = #tpu.pipeline_mode<synchronous>, transform_indices = @transform_5, window_bounds = array<i64: 2, 64, 192>}, {pipeline_mode = #tpu.pipeline_mode<synchronous>, transform_indices = @transform_6, window_bounds = array<i64: 2, 1, 192>}, {pipeline_mode = #tpu.pipeline_mode<synchronous>, transform_indices = @transform_7, window_bounds = array<i64: 2, 64, 64>}, {pipeline_mode = #tpu.pipeline_mode<synchronous>, transform_indices = @transform_8, window_bounds = array<i64: 2, 1, 64>}, {pipeline_mode = #tpu.pipeline_mode<synchronous>, transform_indices = @transform_9, window_bounds = array<i64: 2, 1, 64>}, {pipeline_mode = #tpu.pipeline_mode<synchronous>, transform_indices = @transform_10, window_bounds = array<i64: 2, 1, 64>}, {pipeline_mode = #tpu.pipeline_mode<synchronous>, transform_indices = @transform_11, window_bounds = array<i64: 2, 64, 128>}, {pipeline_mode = #tpu.pipeline_mode<synchronous>, transform_indices = @transform_12, window_bounds = array<i64: 2, 1, 128>}, {pipeline_mode = #tpu.pipeline_mode<synchronous>, transform_indices = @transform_13, window_bounds = array<i64: 2, 128, 64>}, {pipeline_mode = #tpu.pipeline_mode<synchronous>, transform_indices = @transform_14, window_bounds = array<i64: 2, 1, 64>}, {pipeline_mode = #tpu.pipeline_mode<synchronous>, transform_indices = @transform_15, window_bounds = array<i64: 1, 64>}, {pipeline_mode = #tpu.pipeline_mode<synchronous>, transform_indices = @transform_16, window_bounds = array<i64: 1, 64>}, {pipeline_mode = #tpu.pipeline_mode<synchronous>, transform_indices = @transform_17, window_bounds = array<i64: 64, 128>}, {pipeline_mode = #tpu.pipeline_mode<synchronous>, transform_indices = @transform_18, window_bounds = array<i64: 1, 128>}, {transform_indices = @transform_19, window_bounds = array<i64: 2, 128>}]} {
    %cst = arith.constant 0.000000e+00 : bf16
    %0 = vector.broadcast %cst : bf16 to vector<2x8x768xbf16>
    %c0 = arith.constant 0 : index
    %c0_0 = arith.constant 0 : index
    %c0_1 = arith.constant 0 : index
    %1 = vector.load %arg21[%c0, %c0_0, %c0_1] : memref<2x8x768xbf16, #tpu.memory_space<vmem>>, vector<2x8x768xbf16>
    tpu.vector_store %arg21[%c0, %c0_0, %c0_1], %0 {strides = array<i32>} : memref<2x8x768xbf16, #tpu.memory_space<vmem>>, vector<2x8x768xbf16>,
    %c0_2 = arith.constant 0 : index
    %c0_3 = arith.constant 0 : index
    %c0_4 = arith.constant 0 : index
    %2 = vector.load %arg1[%c0_2, %c0_3, %c0_4] : memref<2x4x768xbf16, #tpu.memory_space<vmem>>, vector<2x4x768xbf16>
    %c0_5 = arith.constant 0 : index
    %c0_6 = arith.constant 0 : index
    %c0_7 = arith.constant 0 : index
    %3 = vector.load %arg21[%c0_5, %c0_6, %c0_7] : memref<2x8x768xbf16, #tpu.memory_space<vmem>>, vector<2x4x768xbf16>
    tpu.vector_store %arg21[%c0_5, %c0_6, %c0_7], %2 {strides = array<i32>} : memref<2x8x768xbf16, #tpu.memory_space<vmem>>, vector<2x4x768xbf16>,
    %c0_8 = arith.constant 0 : index
    %c0_9 = arith.constant 0 : index
    %c0_10 = arith.constant 0 : index
    %4 = vector.load %arg21[%c0_8, %c0_9, %c0_10] : memref<2x8x768xbf16, #tpu.memory_space<vmem>>, vector<2x8x768xbf16>
    %5 = vector.shape_cast %4 : vector<2x8x768xbf16> to vector<16x768xbf16>
    %c0_11 = arith.constant 0 : index
    %c0_12 = arith.constant 0 : index
    %6 = vector.load %arg2[%c0_11, %c0_12] : memref<768x64xbf16, #tpu.memory_space<vmem>>, vector<768x64xbf16>
    %cst_13 = arith.constant dense<0.000000e+00> : vector<16x64xf32>
    %7 = tpu.matmul %5, %6, %cst_13 {dimension_numbers = #tpu.dot_dimension_numbers<[1], [0], [0], [1], [0, 0, 1, 1], [], []>} : vector<16x768xbf16>, vector<768x64xbf16>, vector<16x64xf32> -> vector<16x64xf32>
    %8 = vector.shape_cast %7 : vector<16x64xf32> to vector<2x8x64xf32>
    %c0_14 = arith.constant 0 : index
    %c0_15 = arith.constant 0 : index
    %9 = vector.load %arg3[%c0_14, %c0_15] : memref<8x64xf32, #tpu.memory_space<vmem>>, vector<8x64xf32>
    %10 = vector.shape_cast %9 : vector<8x64xf32> to vector<1x8x64xf32>
    %11 = vector.broadcast %10 : vector<1x8x64xf32> to vector<2x8x64xf32>
    %12 = arith.addf %8, %11 : vector<2x8x64xf32>
    %13 = vector.shape_cast %12 : vector<2x8x64xf32> to vector<16x64xf32>
    %14 = tpu.iota {dimensions = array<i32: 2>} : vector<1x1x8xi32>
    %c5_i32 = arith.constant 5 : i32
    %15 = vector.broadcast %c5_i32 : i32 to vector<1x1x8xi32>
    %16 = arith.cmpi slt, %14, %15 : vector<1x1x8xi32>
    %c0_16 = arith.constant 0 : index
    %c0_17 = arith.constant 0 : index
    %c0_18 = arith.constant 0 : index
    %17 = vector.load %arg4[%c0_16, %c0_17, %c0_18] : memref<2x1x64xf32, #tpu.memory_space<vmem>>, vector<1x1x64xf32>
    %18 = vector.shape_cast %17 : vector<1x1x64xf32> to vector<1x64xf32>
    %c0_19 = arith.constant 0 : index
    %c0_20 = arith.constant 0 : index
    %c0_21 = arith.constant 0 : index
    %19 = vector.load %arg5[%c0_19, %c0_20, %c0_21] : memref<2x1x64xf32, #tpu.memory_space<vmem>>, vector<1x1x64xf32>
    %20 = vector.shape_cast %19 : vector<1x1x64xf32> to vector<1x64xf32>
    %cst_22 = arith.constant dense<0.000000e+00> : vector<16xf32>
    %21 = vector.multi_reduction <add>, %13, %cst_22 [1] : vector<16x64xf32> to vector<16xf32>
    %22 = vector.shape_cast %21 : vector<16xf32> to vector<16x1xf32>
    %cst_23 = arith.constant 6.400000e+01 : f32
    %23 = vector.broadcast %cst_23 : f32 to vector<16x1xf32>
    %24 = arith.divf %22, %23 : vector<16x1xf32>
    %25 = vector.broadcast %24 : vector<16x1xf32> to vector<16x64xf32>
    %26 = arith.subf %13, %25 : vector<16x64xf32>
    %27 = arith.mulf %26, %26 : vector<16x64xf32>
    %cst_24 = arith.constant dense<0.000000e+00> : vector<16xf32>
    %28 = vector.multi_reduction <add>, %27, %cst_24 [1] : vector<16x64xf32> to vector<16xf32>
    %29 = vector.shape_cast %28 : vector<16xf32> to vector<16x1xf32>
    %cst_25 = arith.constant 6.400000e+01 : f32
    %30 = vector.broadcast %cst_25 : f32 to vector<16x1xf32>
    %31 = arith.divf %29, %30 : vector<16x1xf32>
    %32 = vector.broadcast %24 : vector<16x1xf32> to vector<16x64xf32>
    %33 = arith.subf %13, %32 : vector<16x64xf32>
    %cst_26 = arith.constant 9.99999997E-7 : f32
    %34 = vector.broadcast %cst_26 : f32 to vector<16x1xf32>
    %35 = arith.addf %31, %34 : vector<16x1xf32>
    %36 = math.rsqrt %35 : vector<16x1xf32>
    %37 = vector.broadcast %36 : vector<16x1xf32> to vector<16x64xf32>
    %38 = arith.mulf %33, %37 : vector<16x64xf32>
    %39 = vector.broadcast %18 : vector<1x64xf32> to vector<16x64xf32>
    %40 = arith.mulf %38, %39 : vector<16x64xf32>
    %41 = vector.broadcast %20 : vector<1x64xf32> to vector<16x64xf32>
    %42 = arith.addf %40, %41 : vector<16x64xf32>
    %43 = arith.truncf %42 : vector<16x64xf32> to vector<16x64xbf16>
    %c0_27 = arith.constant 0 : index
    %c0_28 = arith.constant 0 : index
    %c0_29 = arith.constant 0 : index
    %44 = vector.load %arg6[%c0_27, %c0_28, %c0_29] : memref<2x64x192xbf16, #tpu.memory_space<vmem>>, vector<1x64x192xbf16>
    %45 = vector.shape_cast %44 : vector<1x64x192xbf16> to vector<64x192xbf16>
    %cst_30 = arith.constant dense<0.000000e+00> : vector<16x192xf32>
    %46 = tpu.matmul %43, %45, %cst_30 {dimension_numbers = #tpu.dot_dimension_numbers<[1], [0], [0], [1], [0, 0, 1, 1], [], []>} : vector<16x64xbf16>, vector<64x192xbf16>, vector<16x192xf32> -> vector<16x192xf32>
    %c0_31 = arith.constant 0 : index
    %c0_32 = arith.constant 0 : index
    %c0_33 = arith.constant 0 : index
    %47 = vector.load %arg7[%c0_31, %c0_32, %c0_33] : memref<2x1x192xf32, #tpu.memory_space<vmem>>, vector<1x1x192xf32>
    %48 = vector.shape_cast %47 : vector<1x1x192xf32> to vector<1x192xf32>
    %49 = vector.broadcast %48 : vector<1x192xf32> to vector<16x192xf32>
    %50 = arith.addf %46, %49 : vector<16x192xf32>
    %51 = vector.extract_strided_slice %50 {offsets = [0, 0], sizes = [16, 16], strides = [1, 1]} : vector<16x192xf32> to vector<16x16xf32>
    %52 = vector.extract_strided_slice %50 {offsets = [0, 16], sizes = [16, 16], strides = [1, 1]} : vector<16x192xf32> to vector<16x16xf32>
    %53 = vector.extract_strided_slice %50 {offsets = [0, 32], sizes = [16, 16], strides = [1, 1]} : vector<16x192xf32> to vector<16x16xf32>
    %54 = vector.extract_strided_slice %50 {offsets = [0, 48], sizes = [16, 16], strides = [1, 1]} : vector<16x192xf32> to vector<16x16xf32>
    %55 = vector.shape_cast %51 : vector<16x16xf32> to vector<1x16x16xf32>
    %56 = vector.shape_cast %52 : vector<16x16xf32> to vector<1x16x16xf32>
    %57 = vector.shape_cast %53 : vector<16x16xf32> to vector<1x16x16xf32>
    %58 = vector.shape_cast %54 : vector<16x16xf32> to vector<1x16x16xf32>
    %59 = tpu.concatenate %55, %56, %57, %58 in 0 : vector<1x16x16xf32>, vector<1x16x16xf32>, vector<1x16x16xf32>, vector<1x16x16xf32> -> vector<4x16x16xf32>
    %60 = vector.shape_cast %59 : vector<4x16x16xf32> to vector<8x8x16xf32>
    %61 = vector.extract_strided_slice %50 {offsets = [0, 64], sizes = [16, 16], strides = [1, 1]} : vector<16x192xf32> to vector<16x16xf32>
    %62 = vector.extract_strided_slice %50 {offsets = [0, 80], sizes = [16, 16], strides = [1, 1]} : vector<16x192xf32> to vector<16x16xf32>
    %63 = vector.extract_strided_slice %50 {offsets = [0, 96], sizes = [16, 16], strides = [1, 1]} : vector<16x192xf32> to vector<16x16xf32>
    %64 = vector.extract_strided_slice %50 {offsets = [0, 112], sizes = [16, 16], strides = [1, 1]} : vector<16x192xf32> to vector<16x16xf32>
    %65 = vector.shape_cast %61 : vector<16x16xf32> to vector<1x16x16xf32>
    %66 = vector.shape_cast %62 : vector<16x16xf32> to vector<1x16x16xf32>
    %67 = vector.shape_cast %63 : vector<16x16xf32> to vector<1x16x16xf32>
    %68 = vector.shape_cast %64 : vector<16x16xf32> to vector<1x16x16xf32>
    %69 = tpu.concatenate %65, %66, %67, %68 in 0 : vector<1x16x16xf32>, vector<1x16x16xf32>, vector<1x16x16xf32>, vector<1x16x16xf32> -> vector<4x16x16xf32>
    %70 = vector.shape_cast %69 : vector<4x16x16xf32> to vector<8x8x16xf32>
    %71 = vector.extract_strided_slice %50 {offsets = [0, 128], sizes = [16, 16], strides = [1, 1]} : vector<16x192xf32> to vector<16x16xf32>
    %72 = vector.extract_strided_slice %50 {offsets = [0, 144], sizes = [16, 16], strides = [1, 1]} : vector<16x192xf32> to vector<16x16xf32>
    %73 = vector.extract_strided_slice %50 {offsets = [0, 160], sizes = [16, 16], strides = [1, 1]} : vector<16x192xf32> to vector<16x16xf32>
    %74 = vector.extract_strided_slice %50 {offsets = [0, 176], sizes = [16, 16], strides = [1, 1]} : vector<16x192xf32> to vector<16x16xf32>
    %75 = vector.shape_cast %71 : vector<16x16xf32> to vector<1x16x16xf32>
    %76 = vector.shape_cast %72 : vector<16x16xf32> to vector<1x16x16xf32>
    %77 = vector.shape_cast %73 : vector<16x16xf32> to vector<1x16x16xf32>
    %78 = vector.shape_cast %74 : vector<16x16xf32> to vector<1x16x16xf32>
    %79 = tpu.concatenate %75, %76, %77, %78 in 0 : vector<1x16x16xf32>, vector<1x16x16xf32>, vector<1x16x16xf32>, vector<1x16x16xf32> -> vector<4x16x16xf32>
    %80 = vector.shape_cast %79 : vector<4x16x16xf32> to vector<8x8x16xf32>
    "tpu.trace_start"() <{level = 10 : i32, message = "bqk,bmk->bqm"}> : () -> ()
    %cst_34 = arith.constant dense<0.000000e+00> : vector<8x8x8xf32>
    %81 = tpu.matmul %60, %70, %cst_34 {dimension_numbers = #tpu.dot_dimension_numbers<[2], [2], [1], [1], [0, 0, 0, 1, 1, 1], [0], [0]>} : vector<8x8x16xf32>, vector<8x8x16xf32>, vector<8x8x8xf32> -> vector<8x8x8xf32>
    %cst_35 = arith.constant -1.000000e+30 : f32
    "tpu.trace_stop"() : () -> ()
    %82 = vector.shape_cast %16 : vector<1x1x8xi1> to vector<1x1x8xi1>
    %83 = vector.broadcast %82 : vector<1x1x8xi1> to vector<8x8x8xi1>
    %84 = vector.broadcast %cst_35 : f32 to vector<8x8x8xf32>
    %85 = arith.select %83, %81, %84 : vector<8x8x8xi1>, vector<8x8x8xf32>
    %cst_36 = arith.constant dense<0xFF800000> : vector<8x8xf32>
    %86 = vector.multi_reduction <maximumf>, %85, %cst_36 [2] : vector<8x8x8xf32> to vector<8x8xf32>
    %87 = vector.shape_cast %86 : vector<8x8xf32> to vector<8x8x1xf32>
    %88 = vector.broadcast %87 : vector<8x8x1xf32> to vector<8x8x8xf32>
    %89 = arith.subf %85, %88 : vector<8x8x8xf32>
    %90 = math.exp %89 : vector<8x8x8xf32>
    %cst_37 = arith.constant dense<0.000000e+00> : vector<8x8xf32>
    %91 = vector.multi_reduction <add>, %90, %cst_37 [2] : vector<8x8x8xf32> to vector<8x8xf32>
    %92 = vector.shape_cast %91 : vector<8x8xf32> to vector<8x8x1xf32>
    %93 = tpu.reciprocal %92 {approx = true} : vector<8x8x1xf32> -> vector<8x8x1xf32>
    %94 = vector.broadcast %93 : vector<8x8x1xf32> to vector<8x8x8xf32>
    %95 = arith.mulf %90, %94 : vector<8x8x8xf32>
    "tpu.trace_start"() <{level = 10 : i32, message = "bqm,bmk->bqk"}> : () -> ()
    %cst_38 = arith.constant dense<0.000000e+00> : vector<8x8x16xf32>
    %96 = tpu.matmul %95, %80, %cst_38 {dimension_numbers = #tpu.dot_dimension_numbers<[2], [1], [1], [2], [0, 0, 0, 1, 1, 2], [0], [0]>} : vector<8x8x8xf32>, vector<8x8x16xf32>, vector<8x8x16xf32> -> vector<8x8x16xf32>
    "tpu.trace_stop"() : () -> ()
    %97 = vector.shape_cast %96 : vector<8x8x16xf32> to vector<4x16x16xf32>
    %98 = vector.extract_strided_slice %97 {offsets = [0, 0, 0], sizes = [1, 16, 16], strides = [1, 1, 1]} : vector<4x16x16xf32> to vector<1x16x16xf32>
    %99 = vector.shape_cast %98 : vector<1x16x16xf32> to vector<16x16xf32>
    %100 = vector.extract_strided_slice %97 {offsets = [1, 0, 0], sizes = [1, 16, 16], strides = [1, 1, 1]} : vector<4x16x16xf32> to vector<1x16x16xf32>
    %101 = vector.shape_cast %100 : vector<1x16x16xf32> to vector<16x16xf32>
    %102 = vector.extract_strided_slice %97 {offsets = [2, 0, 0], sizes = [1, 16, 16], strides = [1, 1, 1]} : vector<4x16x16xf32> to vector<1x16x16xf32>
    %103 = vector.shape_cast %102 : vector<1x16x16xf32> to vector<16x16xf32>
    %104 = vector.extract_strided_slice %97 {offsets = [3, 0, 0], sizes = [1, 16, 16], strides = [1, 1, 1]} : vector<4x16x16xf32> to vector<1x16x16xf32>
    %105 = vector.shape_cast %104 : vector<1x16x16xf32> to vector<16x16xf32>
    %106 = tpu.concatenate %99, %101, %103, %105 in 1 : vector<16x16xf32>, vector<16x16xf32>, vector<16x16xf32>, vector<16x16xf32> -> vector<16x64xf32>
    %107 = arith.truncf %106 : vector<16x64xf32> to vector<16x64xbf16>
    %c0_39 = arith.constant 0 : index
    %c0_40 = arith.constant 0 : index
    %c0_41 = arith.constant 0 : index
    %108 = vector.load %arg8[%c0_39, %c0_40, %c0_41] : memref<2x64x64xbf16, #tpu.memory_space<vmem>>, vector<1x64x64xbf16>
    %109 = vector.shape_cast %108 : vector<1x64x64xbf16> to vector<64x64xbf16>
    %cst_42 = arith.constant dense<0.000000e+00> : vector<16x64xf32>
    %110 = tpu.matmul %107, %109, %cst_42 {dimension_numbers = #tpu.dot_dimension_numbers<[1], [0], [0], [1], [0, 0, 1, 1], [], []>} : vector<16x64xbf16>, vector<64x64xbf16>, vector<16x64xf32> -> vector<16x64xf32>
    %111 = arith.addf %13, %110 : vector<16x64xf32>
    %c0_43 = arith.constant 0 : index
    %c0_44 = arith.constant 0 : index
    %c0_45 = arith.constant 0 : index
    %112 = vector.load %arg9[%c0_43, %c0_44, %c0_45] : memref<2x1x64xf32, #tpu.memory_space<vmem>>, vector<1x1x64xf32>
    %113 = vector.shape_cast %112 : vector<1x1x64xf32> to vector<1x64xf32>
    %114 = vector.broadcast %113 : vector<1x64xf32> to vector<16x64xf32>
    %115 = arith.addf %111, %114 : vector<16x64xf32>
    %c0_46 = arith.constant 0 : index
    %c0_47 = arith.constant 0 : index
    %c0_48 = arith.constant 0 : index
    %116 = vector.load %arg10[%c0_46, %c0_47, %c0_48] : memref<2x1x64xf32, #tpu.memory_space<vmem>>, vector<1x1x64xf32>
    %117 = vector.shape_cast %116 : vector<1x1x64xf32> to vector<1x64xf32>
    %c0_49 = arith.constant 0 : index
    %c0_50 = arith.constant 0 : index
    %c0_51 = arith.constant 0 : index
    %118 = vector.load %arg11[%c0_49, %c0_50, %c0_51] : memref<2x1x64xf32, #tpu.memory_space<vmem>>, vector<1x1x64xf32>
    %119 = vector.shape_cast %118 : vector<1x1x64xf32> to vector<1x64xf32>
    %cst_52 = arith.constant dense<0.000000e+00> : vector<16xf32>
    %120 = vector.multi_reduction <add>, %115, %cst_52 [1] : vector<16x64xf32> to vector<16xf32>
    %121 = vector.shape_cast %120 : vector<16xf32> to vector<16x1xf32>
    %cst_53 = arith.constant 6.400000e+01 : f32
    %122 = vector.broadcast %cst_53 : f32 to vector<16x1xf32>
    %123 = arith.divf %121, %122 : vector<16x1xf32>
    %124 = vector.broadcast %123 : vector<16x1xf32> to vector<16x64xf32>
    %125 = arith.subf %115, %124 : vector<16x64xf32>
    %126 = arith.mulf %125, %125 : vector<16x64xf32>
    %cst_54 = arith.constant dense<0.000000e+00> : vector<16xf32>
    %127 = vector.multi_reduction <add>, %126, %cst_54 [1] : vector<16x64xf32> to vector<16xf32>
    %128 = vector.shape_cast %127 : vector<16xf32> to vector<16x1xf32>
    %cst_55 = arith.constant 6.400000e+01 : f32
    %129 = vector.broadcast %cst_55 : f32 to vector<16x1xf32>
    %130 = arith.divf %128, %129 : vector<16x1xf32>
    %131 = vector.broadcast %123 : vector<16x1xf32> to vector<16x64xf32>
    %132 = arith.subf %115, %131 : vector<16x64xf32>
    %cst_56 = arith.constant 9.99999997E-7 : f32
    %133 = vector.broadcast %cst_56 : f32 to vector<16x1xf32>
    %134 = arith.addf %130, %133 : vector<16x1xf32>
    %135 = math.rsqrt %134 : vector<16x1xf32>
    %136 = vector.broadcast %135 : vector<16x1xf32> to vector<16x64xf32>
    %137 = arith.mulf %132, %136 : vector<16x64xf32>
    %138 = vector.broadcast %117 : vector<1x64xf32> to vector<16x64xf32>
    %139 = arith.mulf %137, %138 : vector<16x64xf32>
    %140 = vector.broadcast %119 : vector<1x64xf32> to vector<16x64xf32>
    %141 = arith.addf %139, %140 : vector<16x64xf32>
    %142 = arith.truncf %141 : vector<16x64xf32> to vector<16x64xbf16>
    %c0_57 = arith.constant 0 : index
    %c0_58 = arith.constant 0 : index
    %c0_59 = arith.constant 0 : index
    %143 = vector.load %arg12[%c0_57, %c0_58, %c0_59] : memref<2x64x128xbf16, #tpu.memory_space<vmem>>, vector<1x64x128xbf16>
    %144 = vector.shape_cast %143 : vector<1x64x128xbf16> to vector<64x128xbf16>
    %cst_60 = arith.constant dense<0.000000e+00> : vector<16x128xf32>
    %145 = tpu.matmul %142, %144, %cst_60 {dimension_numbers = #tpu.dot_dimension_numbers<[1], [0], [0], [1], [0, 0, 1, 1], [], []>} : vector<16x64xbf16>, vector<64x128xbf16>, vector<16x128xf32> -> vector<16x128xf32>
    %c0_61 = arith.constant 0 : index
    %c0_62 = arith.constant 0 : index
    %c0_63 = arith.constant 0 : index
    %146 = vector.load %arg13[%c0_61, %c0_62, %c0_63] : memref<2x1x128xf32, #tpu.memory_space<vmem>>, vector<1x1x128xf32>
    %147 = vector.shape_cast %146 : vector<1x1x128xf32> to vector<1x128xf32>
    %148 = vector.broadcast %147 : vector<1x128xf32> to vector<16x128xf32>
    %149 = arith.addf %145, %148 : vector<16x128xf32>
    %cst_64 = arith.constant 5.000000e-01 : f32
    %150 = vector.broadcast %cst_64 : f32 to vector<16x128xf32>
    %151 = arith.mulf %150, %149 : vector<16x128xf32>
    %cst_65 = arith.constant 4.471500e-02 : f32
    %152 = vector.broadcast %cst_65 : f32 to vector<16x128xf32>
    %153 = arith.mulf %152, %149 : vector<16x128xf32>
    %154 = arith.mulf %153, %149 : vector<16x128xf32>
    %155 = arith.mulf %154, %149 : vector<16x128xf32>
    %156 = arith.addf %149, %155 : vector<16x128xf32>
    %cst_66 = arith.constant 0.797884583 : f32
    %157 = vector.broadcast %cst_66 : f32 to vector<16x128xf32>
    %158 = arith.mulf %157, %156 : vector<16x128xf32>
    %159 = math.tanh %158 : vector<16x128xf32>
    %cst_67 = arith.constant 1.000000e+00 : f32
    %160 = vector.broadcast %cst_67 : f32 to vector<16x128xf32>
    %161 = arith.addf %160, %159 : vector<16x128xf32>
    %162 = arith.mulf %151, %161 : vector<16x128xf32>
    %163 = arith.truncf %162 : vector<16x128xf32> to vector<16x128xbf16>
    %c0_68 = arith.constant 0 : index
    %c0_69 = arith.constant 0 : index
    %c0_70 = arith.constant 0 : index
    %164 = vector.load %arg14[%c0_68, %c0_69, %c0_70] : memref<2x128x64xbf16, #tpu.memory_space<vmem>>, vector<1x128x64xbf16>
    %165 = vector.shape_cast %164 : vector<1x128x64xbf16> to vector<128x64xbf16>
    %cst_71 = arith.constant dense<0.000000e+00> : vector<16x64xf32>
    %166 = tpu.matmul %163, %165, %cst_71 {dimension_numbers = #tpu.dot_dimension_numbers<[1], [0], [0], [1], [0, 0, 1, 1], [], []>} : vector<16x128xbf16>, vector<128x64xbf16>, vector<16x64xf32> -> vector<16x64xf32>
    %167 = arith.addf %115, %166 : vector<16x64xf32>
    %c0_72 = arith.constant 0 : index
    %c0_73 = arith.constant 0 : index
    %c0_74 = arith.constant 0 : index
    %168 = vector.load %arg15[%c0_72, %c0_73, %c0_74] : memref<2x1x64xf32, #tpu.memory_space<vmem>>, vector<1x1x64xf32>
    %169 = vector.shape_cast %168 : vector<1x1x64xf32> to vector<1x64xf32>
    %170 = vector.broadcast %169 : vector<1x64xf32> to vector<16x64xf32>
    %171 = arith.addf %167, %170 : vector<16x64xf32>
    %c1 = arith.constant 1 : index
    %c0_75 = arith.constant 0 : index
    %c0_76 = arith.constant 0 : index
    %172 = vector.load %arg4[%c1, %c0_75, %c0_76] : memref<2x1x64xf32, #tpu.memory_space<vmem>>, vector<1x1x64xf32>
    %173 = vector.shape_cast %172 : vector<1x1x64xf32> to vector<1x64xf32>
    %c1_77 = arith.constant 1 : index
    %c0_78 = arith.constant 0 : index
    %c0_79 = arith.constant 0 : index
    %174 = vector.load %arg5[%c1_77, %c0_78, %c0_79] : memref<2x1x64xf32, #tpu.memory_space<vmem>>, vector<1x1x64xf32>
    %175 = vector.shape_cast %174 : vector<1x1x64xf32> to vector<1x64xf32>
    %cst_80 = arith.constant dense<0.000000e+00> : vector<16xf32>
    %176 = vector.multi_reduction <add>, %171, %cst_80 [1] : vector<16x64xf32> to vector<16xf32>
    %177 = vector.shape_cast %176 : vector<16xf32> to vector<16x1xf32>
    %cst_81 = arith.constant 6.400000e+01 : f32
    %178 = vector.broadcast %cst_81 : f32 to vector<16x1xf32>
    %179 = arith.divf %177, %178 : vector<16x1xf32>
    %180 = vector.broadcast %179 : vector<16x1xf32> to vector<16x64xf32>
    %181 = arith.subf %171, %180 : vector<16x64xf32>
    %182 = arith.mulf %181, %181 : vector<16x64xf32>
    %cst_82 = arith.constant dense<0.000000e+00> : vector<16xf32>
    %183 = vector.multi_reduction <add>, %182, %cst_82 [1] : vector<16x64xf32> to vector<16xf32>
    %184 = vector.shape_cast %183 : vector<16xf32> to vector<16x1xf32>
    %cst_83 = arith.constant 6.400000e+01 : f32
    %185 = vector.broadcast %cst_83 : f32 to vector<16x1xf32>
    %186 = arith.divf %184, %185 : vector<16x1xf32>
    %187 = vector.broadcast %179 : vector<16x1xf32> to vector<16x64xf32>
    %188 = arith.subf %171, %187 : vector<16x64xf32>
    %cst_84 = arith.constant 9.99999997E-7 : f32
    %189 = vector.broadcast %cst_84 : f32 to vector<16x1xf32>
    %190 = arith.addf %186, %189 : vector<16x1xf32>
    %191 = math.rsqrt %190 : vector<16x1xf32>
    %192 = vector.broadcast %191 : vector<16x1xf32> to vector<16x64xf32>
    %193 = arith.mulf %188, %192 : vector<16x64xf32>
    %194 = vector.broadcast %173 : vector<1x64xf32> to vector<16x64xf32>
    %195 = arith.mulf %193, %194 : vector<16x64xf32>
    %196 = vector.broadcast %175 : vector<1x64xf32> to vector<16x64xf32>
    %197 = arith.addf %195, %196 : vector<16x64xf32>
    %198 = arith.truncf %197 : vector<16x64xf32> to vector<16x64xbf16>
    %c1_85 = arith.constant 1 : index
    %c0_86 = arith.constant 0 : index
    %c0_87 = arith.constant 0 : index
    %199 = vector.load %arg6[%c1_85, %c0_86, %c0_87] : memref<2x64x192xbf16, #tpu.memory_space<vmem>>, vector<1x64x192xbf16>
    %200 = vector.shape_cast %199 : vector<1x64x192xbf16> to vector<64x192xbf16>
    %cst_88 = arith.constant dense<0.000000e+00> : vector<16x192xf32>
    %201 = tpu.matmul %198, %200, %cst_88 {dimension_numbers = #tpu.dot_dimension_numbers<[1], [0], [0], [1], [0, 0, 1, 1], [], []>} : vector<16x64xbf16>, vector<64x192xbf16>, vector<16x192xf32> -> vector<16x192xf32>
    %c1_89 = arith.constant 1 : index
    %c0_90 = arith.constant 0 : index
    %c0_91 = arith.constant 0 : index
    %202 = vector.load %arg7[%c1_89, %c0_90, %c0_91] : memref<2x1x192xf32, #tpu.memory_space<vmem>>, vector<1x1x192xf32>
    %203 = vector.shape_cast %202 : vector<1x1x192xf32> to vector<1x192xf32>
    %204 = vector.broadcast %203 : vector<1x192xf32> to vector<16x192xf32>
    %205 = arith.addf %201, %204 : vector<16x192xf32>
    %206 = vector.extract_strided_slice %205 {offsets = [0, 0], sizes = [16, 16], strides = [1, 1]} : vector<16x192xf32> to vector<16x16xf32>
    %207 = vector.extract_strided_slice %205 {offsets = [0, 16], sizes = [16, 16], strides = [1, 1]} : vector<16x192xf32> to vector<16x16xf32>
    %208 = vector.extract_strided_slice %205 {offsets = [0, 32], sizes = [16, 16], strides = [1, 1]} : vector<16x192xf32> to vector<16x16xf32>
    %209 = vector.extract_strided_slice %205 {offsets = [0, 48], sizes = [16, 16], strides = [1, 1]} : vector<16x192xf32> to vector<16x16xf32>
    %210 = vector.shape_cast %206 : vector<16x16xf32> to vector<1x16x16xf32>
    %211 = vector.shape_cast %207 : vector<16x16xf32> to vector<1x16x16xf32>
    %212 = vector.shape_cast %208 : vector<16x16xf32> to vector<1x16x16xf32>
    %213 = vector.shape_cast %209 : vector<16x16xf32> to vector<1x16x16xf32>
    %214 = tpu.concatenate %210, %211, %212, %213 in 0 : vector<1x16x16xf32>, vector<1x16x16xf32>, vector<1x16x16xf32>, vector<1x16x16xf32> -> vector<4x16x16xf32>
    %215 = vector.shape_cast %214 : vector<4x16x16xf32> to vector<8x8x16xf32>
    %216 = vector.extract_strided_slice %205 {offsets = [0, 64], sizes = [16, 16], strides = [1, 1]} : vector<16x192xf32> to vector<16x16xf32>
    %217 = vector.extract_strided_slice %205 {offsets = [0, 80], sizes = [16, 16], strides = [1, 1]} : vector<16x192xf32> to vector<16x16xf32>
    %218 = vector.extract_strided_slice %205 {offsets = [0, 96], sizes = [16, 16], strides = [1, 1]} : vector<16x192xf32> to vector<16x16xf32>
    %219 = vector.extract_strided_slice %205 {offsets = [0, 112], sizes = [16, 16], strides = [1, 1]} : vector<16x192xf32> to vector<16x16xf32>
    %220 = vector.shape_cast %216 : vector<16x16xf32> to vector<1x16x16xf32>
    %221 = vector.shape_cast %217 : vector<16x16xf32> to vector<1x16x16xf32>
    %222 = vector.shape_cast %218 : vector<16x16xf32> to vector<1x16x16xf32>
    %223 = vector.shape_cast %219 : vector<16x16xf32> to vector<1x16x16xf32>
    %224 = tpu.concatenate %220, %221, %222, %223 in 0 : vector<1x16x16xf32>, vector<1x16x16xf32>, vector<1x16x16xf32>, vector<1x16x16xf32> -> vector<4x16x16xf32>
    %225 = vector.shape_cast %224 : vector<4x16x16xf32> to vector<8x8x16xf32>
    %226 = vector.extract_strided_slice %205 {offsets = [0, 128], sizes = [16, 16], strides = [1, 1]} : vector<16x192xf32> to vector<16x16xf32>
    %227 = vector.extract_strided_slice %205 {offsets = [0, 144], sizes = [16, 16], strides = [1, 1]} : vector<16x192xf32> to vector<16x16xf32>
    %228 = vector.extract_strided_slice %205 {offsets = [0, 160], sizes = [16, 16], strides = [1, 1]} : vector<16x192xf32> to vector<16x16xf32>
    %229 = vector.extract_strided_slice %205 {offsets = [0, 176], sizes = [16, 16], strides = [1, 1]} : vector<16x192xf32> to vector<16x16xf32>
    %230 = vector.shape_cast %226 : vector<16x16xf32> to vector<1x16x16xf32>
    %231 = vector.shape_cast %227 : vector<16x16xf32> to vector<1x16x16xf32>
    %232 = vector.shape_cast %228 : vector<16x16xf32> to vector<1x16x16xf32>
    %233 = vector.shape_cast %229 : vector<16x16xf32> to vector<1x16x16xf32>
    %234 = tpu.concatenate %230, %231, %232, %233 in 0 : vector<1x16x16xf32>, vector<1x16x16xf32>, vector<1x16x16xf32>, vector<1x16x16xf32> -> vector<4x16x16xf32>
    %235 = vector.shape_cast %234 : vector<4x16x16xf32> to vector<8x8x16xf32>
    "tpu.trace_start"() <{level = 10 : i32, message = "bqk,bmk->bqm"}> : () -> ()
    %cst_92 = arith.constant dense<0.000000e+00> : vector<8x8x8xf32>
    %236 = tpu.matmul %215, %225, %cst_92 {dimension_numbers = #tpu.dot_dimension_numbers<[2], [2], [1], [1], [0, 0, 0, 1, 1, 1], [0], [0]>} : vector<8x8x16xf32>, vector<8x8x16xf32>, vector<8x8x8xf32> -> vector<8x8x8xf32>
    %cst_93 = arith.constant -1.000000e+30 : f32
    "tpu.trace_stop"() : () -> ()
    %237 = vector.shape_cast %16 : vector<1x1x8xi1> to vector<1x1x8xi1>
    %238 = vector.broadcast %237 : vector<1x1x8xi1> to vector<8x8x8xi1>
    %239 = vector.broadcast %cst_93 : f32 to vector<8x8x8xf32>
    %240 = arith.select %238, %236, %239 : vector<8x8x8xi1>, vector<8x8x8xf32>
    %cst_94 = arith.constant dense<0xFF800000> : vector<8x8xf32>
    %241 = vector.multi_reduction <maximumf>, %240, %cst_94 [2] : vector<8x8x8xf32> to vector<8x8xf32>
    %242 = vector.shape_cast %241 : vector<8x8xf32> to vector<8x8x1xf32>
    %243 = vector.broadcast %242 : vector<8x8x1xf32> to vector<8x8x8xf32>
    %244 = arith.subf %240, %243 : vector<8x8x8xf32>
    %245 = math.exp %244 : vector<8x8x8xf32>
    %cst_95 = arith.constant dense<0.000000e+00> : vector<8x8xf32>
    %246 = vector.multi_reduction <add>, %245, %cst_95 [2] : vector<8x8x8xf32> to vector<8x8xf32>
    %247 = vector.shape_cast %246 : vector<8x8xf32> to vector<8x8x1xf32>
    %248 = tpu.reciprocal %247 {approx = true} : vector<8x8x1xf32> -> vector<8x8x1xf32>
    %249 = vector.broadcast %248 : vector<8x8x1xf32> to vector<8x8x8xf32>
    %250 = arith.mulf %245, %249 : vector<8x8x8xf32>
    "tpu.trace_start"() <{level = 10 : i32, message = "bqm,bmk->bqk"}> : () -> ()
    %cst_96 = arith.constant dense<0.000000e+00> : vector<8x8x16xf32>
    %251 = tpu.matmul %250, %235, %cst_96 {dimension_numbers = #tpu.dot_dimension_numbers<[2], [1], [1], [2], [0, 0, 0, 1, 1, 2], [0], [0]>} : vector<8x8x8xf32>, vector<8x8x16xf32>, vector<8x8x16xf32> -> vector<8x8x16xf32>
    "tpu.trace_stop"() : () -> ()
    %252 = vector.shape_cast %251 : vector<8x8x16xf32> to vector<4x16x16xf32>
    %253 = vector.extract_strided_slice %252 {offsets = [0, 0, 0], sizes = [1, 16, 16], strides = [1, 1, 1]} : vector<4x16x16xf32> to vector<1x16x16xf32>
    %254 = vector.shape_cast %253 : vector<1x16x16xf32> to vector<16x16xf32>
    %255 = vector.extract_strided_slice %252 {offsets = [1, 0, 0], sizes = [1, 16, 16], strides = [1, 1, 1]} : vector<4x16x16xf32> to vector<1x16x16xf32>
    %256 = vector.shape_cast %255 : vector<1x16x16xf32> to vector<16x16xf32>
    %257 = vector.extract_strided_slice %252 {offsets = [2, 0, 0], sizes = [1, 16, 16], strides = [1, 1, 1]} : vector<4x16x16xf32> to vector<1x16x16xf32>
    %258 = vector.shape_cast %257 : vector<1x16x16xf32> to vector<16x16xf32>
    %259 = vector.extract_strided_slice %252 {offsets = [3, 0, 0], sizes = [1, 16, 16], strides = [1, 1, 1]} : vector<4x16x16xf32> to vector<1x16x16xf32>
    %260 = vector.shape_cast %259 : vector<1x16x16xf32> to vector<16x16xf32>
    %261 = tpu.concatenate %254, %256, %258, %260 in 1 : vector<16x16xf32>, vector<16x16xf32>, vector<16x16xf32>, vector<16x16xf32> -> vector<16x64xf32>
    %262 = arith.truncf %261 : vector<16x64xf32> to vector<16x64xbf16>
    %c1_97 = arith.constant 1 : index
    %c0_98 = arith.constant 0 : index
    %c0_99 = arith.constant 0 : index
    %263 = vector.load %arg8[%c1_97, %c0_98, %c0_99] : memref<2x64x64xbf16, #tpu.memory_space<vmem>>, vector<1x64x64xbf16>
    %264 = vector.shape_cast %263 : vector<1x64x64xbf16> to vector<64x64xbf16>
    %cst_100 = arith.constant dense<0.000000e+00> : vector<16x64xf32>
    %265 = tpu.matmul %262, %264, %cst_100 {dimension_numbers = #tpu.dot_dimension_numbers<[1], [0], [0], [1], [0, 0, 1, 1], [], []>} : vector<16x64xbf16>, vector<64x64xbf16>, vector<16x64xf32> -> vector<16x64xf32>
    %266 = arith.addf %171, %265 : vector<16x64xf32>
    %c1_101 = arith.constant 1 : index
    %c0_102 = arith.constant 0 : index
    %c0_103 = arith.constant 0 : index
    %267 = vector.load %arg9[%c1_101, %c0_102, %c0_103] : memref<2x1x64xf32, #tpu.memory_space<vmem>>, vector<1x1x64xf32>
    %268 = vector.shape_cast %267 : vector<1x1x64xf32> to vector<1x64xf32>
    %269 = vector.broadcast %268 : vector<1x64xf32> to vector<16x64xf32>
    %270 = arith.addf %266, %269 : vector<16x64xf32>
    %c1_104 = arith.constant 1 : index
    %c0_105 = arith.constant 0 : index
    %c0_106 = arith.constant 0 : index
    %271 = vector.load %arg10[%c1_104, %c0_105, %c0_106] : memref<2x1x64xf32, #tpu.memory_space<vmem>>, vector<1x1x64xf32>
    %272 = vector.shape_cast %271 : vector<1x1x64xf32> to vector<1x64xf32>
    %c1_107 = arith.constant 1 : index
    %c0_108 = arith.constant 0 : index
    %c0_109 = arith.constant 0 : index
    %273 = vector.load %arg11[%c1_107, %c0_108, %c0_109] : memref<2x1x64xf32, #tpu.memory_space<vmem>>, vector<1x1x64xf32>
    %274 = vector.shape_cast %273 : vector<1x1x64xf32> to vector<1x64xf32>
    %cst_110 = arith.constant dense<0.000000e+00> : vector<16xf32>
    %275 = vector.multi_reduction <add>, %270, %cst_110 [1] : vector<16x64xf32> to vector<16xf32>
    %276 = vector.shape_cast %275 : vector<16xf32> to vector<16x1xf32>
    %cst_111 = arith.constant 6.400000e+01 : f32
    %277 = vector.broadcast %cst_111 : f32 to vector<16x1xf32>
    %278 = arith.divf %276, %277 : vector<16x1xf32>
    %279 = vector.broadcast %278 : vector<16x1xf32> to vector<16x64xf32>
    %280 = arith.subf %270, %279 : vector<16x64xf32>
    %281 = arith.mulf %280, %280 : vector<16x64xf32>
    %cst_112 = arith.constant dense<0.000000e+00> : vector<16xf32>
    %282 = vector.multi_reduction <add>, %281, %cst_112 [1] : vector<16x64xf32> to vector<16xf32>
    %283 = vector.shape_cast %282 : vector<16xf32> to vector<16x1xf32>
    %cst_113 = arith.constant 6.400000e+01 : f32
    %284 = vector.broadcast %cst_113 : f32 to vector<16x1xf32>
    %285 = arith.divf %283, %284 : vector<16x1xf32>
    %286 = vector.broadcast %278 : vector<16x1xf32> to vector<16x64xf32>
    %287 = arith.subf %270, %286 : vector<16x64xf32>
    %cst_114 = arith.constant 9.99999997E-7 : f32
    %288 = vector.broadcast %cst_114 : f32 to vector<16x1xf32>
    %289 = arith.addf %285, %288 : vector<16x1xf32>
    %290 = math.rsqrt %289 : vector<16x1xf32>
    %291 = vector.broadcast %290 : vector<16x1xf32> to vector<16x64xf32>
    %292 = arith.mulf %287, %291 : vector<16x64xf32>
    %293 = vector.broadcast %272 : vector<1x64xf32> to vector<16x64xf32>
    %294 = arith.mulf %292, %293 : vector<16x64xf32>
    %295 = vector.broadcast %274 : vector<1x64xf32> to vector<16x64xf32>
    %296 = arith.addf %294, %295 : vector<16x64xf32>
    %297 = arith.truncf %296 : vector<16x64xf32> to vector<16x64xbf16>
    %c1_115 = arith.constant 1 : index
    %c0_116 = arith.constant 0 : index
    %c0_117 = arith.constant 0 : index
    %298 = vector.load %arg12[%c1_115, %c0_116, %c0_117] : memref<2x64x128xbf16, #tpu.memory_space<vmem>>, vector<1x64x128xbf16>
    %299 = vector.shape_cast %298 : vector<1x64x128xbf16> to vector<64x128xbf16>
    %cst_118 = arith.constant dense<0.000000e+00> : vector<16x128xf32>
    %300 = tpu.matmul %297, %299, %cst_118 {dimension_numbers = #tpu.dot_dimension_numbers<[1], [0], [0], [1], [0, 0, 1, 1], [], []>} : vector<16x64xbf16>, vector<64x128xbf16>, vector<16x128xf32> -> vector<16x128xf32>
    %c1_119 = arith.constant 1 : index
    %c0_120 = arith.constant 0 : index
    %c0_121 = arith.constant 0 : index
    %301 = vector.load %arg13[%c1_119, %c0_120, %c0_121] : memref<2x1x128xf32, #tpu.memory_space<vmem>>, vector<1x1x128xf32>
    %302 = vector.shape_cast %301 : vector<1x1x128xf32> to vector<1x128xf32>
    %303 = vector.broadcast %302 : vector<1x128xf32> to vector<16x128xf32>
    %304 = arith.addf %300, %303 : vector<16x128xf32>
    %cst_122 = arith.constant 5.000000e-01 : f32
    %305 = vector.broadcast %cst_122 : f32 to vector<16x128xf32>
    %306 = arith.mulf %305, %304 : vector<16x128xf32>
    %cst_123 = arith.constant 4.471500e-02 : f32
    %307 = vector.broadcast %cst_123 : f32 to vector<16x128xf32>
    %308 = arith.mulf %307, %304 : vector<16x128xf32>
    %309 = arith.mulf %308, %304 : vector<16x128xf32>
    %310 = arith.mulf %309, %304 : vector<16x128xf32>
    %311 = arith.addf %304, %310 : vector<16x128xf32>
    %cst_124 = arith.constant 0.797884583 : f32
    %312 = vector.broadcast %cst_124 : f32 to vector<16x128xf32>
    %313 = arith.mulf %312, %311 : vector<16x128xf32>
    %314 = math.tanh %313 : vector<16x128xf32>
    %cst_125 = arith.constant 1.000000e+00 : f32
    %315 = vector.broadcast %cst_125 : f32 to vector<16x128xf32>
    %316 = arith.addf %315, %314 : vector<16x128xf32>
    %317 = arith.mulf %306, %316 : vector<16x128xf32>
    %318 = arith.truncf %317 : vector<16x128xf32> to vector<16x128xbf16>
    %c1_126 = arith.constant 1 : index
    %c0_127 = arith.constant 0 : index
    %c0_128 = arith.constant 0 : index
    %319 = vector.load %arg14[%c1_126, %c0_127, %c0_128] : memref<2x128x64xbf16, #tpu.memory_space<vmem>>, vector<1x128x64xbf16>
    %320 = vector.shape_cast %319 : vector<1x128x64xbf16> to vector<128x64xbf16>
    %cst_129 = arith.constant dense<0.000000e+00> : vector<16x64xf32>
    %321 = tpu.matmul %318, %320, %cst_129 {dimension_numbers = #tpu.dot_dimension_numbers<[1], [0], [0], [1], [0, 0, 1, 1], [], []>} : vector<16x128xbf16>, vector<128x64xbf16>, vector<16x64xf32> -> vector<16x64xf32>
    %322 = arith.addf %270, %321 : vector<16x64xf32>
    %c1_130 = arith.constant 1 : index
    %c0_131 = arith.constant 0 : index
    %c0_132 = arith.constant 0 : index
    %323 = vector.load %arg15[%c1_130, %c0_131, %c0_132] : memref<2x1x64xf32, #tpu.memory_space<vmem>>, vector<1x1x64xf32>
    %324 = vector.shape_cast %323 : vector<1x1x64xf32> to vector<1x64xf32>
    %325 = vector.broadcast %324 : vector<1x64xf32> to vector<16x64xf32>
    %326 = arith.addf %322, %325 : vector<16x64xf32>
    %327 = tpu.iota {dimensions = array<i32: 1>} : vector<2x16xi32>
    %328 = tpu.iota {dimensions = array<i32: 0>} : vector<2x16xi32>
    %c8_i32 = arith.constant 8 : i32
    %329 = vector.broadcast %c8_i32 : i32 to vector<2x16xi32>
    %330 = arith.muli %328, %329 : vector<2x16xi32>
    %c4_i32 = arith.constant 4 : i32
    %331 = vector.broadcast %c4_i32 : i32 to vector<2x16xi32>
    %332 = arith.addi %330, %331 : vector<2x16xi32>
    %333 = arith.cmpi eq, %327, %332 : vector<2x16xi32>
    %334 = arith.extui %333 : vector<2x16xi1> to vector<2x16xi32>
    %335 = arith.sitofp %334 : vector<2x16xi32> to vector<2x16xf32>
    %cst_133 = arith.constant dense<0.000000e+00> : vector<2x64xf32>
    %336 = tpu.matmul %335, %326, %cst_133 {dimension_numbers = #tpu.dot_dimension_numbers<[1], [0], [0], [1], [0, 0, 1, 1], [], []>} : vector<2x16xf32>, vector<16x64xf32>, vector<2x64xf32> -> vector<2x64xf32>
    %c0_134 = arith.constant 0 : index
    %c0_135 = arith.constant 0 : index
    %337 = vector.load %arg16[%c0_134, %c0_135] : memref<1x64xf32, #tpu.memory_space<vmem>>, vector<1x64xf32>
    %c0_136 = arith.constant 0 : index
    %c0_137 = arith.constant 0 : index
    %338 = vector.load %arg17[%c0_136, %c0_137] : memref<1x64xf32, #tpu.memory_space<vmem>>, vector<1x64xf32>
    %cst_138 = arith.constant dense<0.000000e+00> : vector<2xf32>
    %339 = vector.multi_reduction <add>, %336, %cst_138 [1] : vector<2x64xf32> to vector<2xf32>
    %340 = vector.shape_cast %339 : vector<2xf32> to vector<2x1xf32>
    %cst_139 = arith.constant 6.400000e+01 : f32
    %341 = vector.broadcast %cst_139 : f32 to vector<2x1xf32>
    %342 = arith.divf %340, %341 : vector<2x1xf32>
    %343 = vector.broadcast %342 : vector<2x1xf32> to vector<2x64xf32>
    %344 = arith.subf %336, %343 : vector<2x64xf32>
    %345 = arith.mulf %344, %344 : vector<2x64xf32>
    %cst_140 = arith.constant dense<0.000000e+00> : vector<2xf32>
    %346 = vector.multi_reduction <add>, %345, %cst_140 [1] : vector<2x64xf32> to vector<2xf32>
    %347 = vector.shape_cast %346 : vector<2xf32> to vector<2x1xf32>
    %cst_141 = arith.constant 6.400000e+01 : f32
    %348 = vector.broadcast %cst_141 : f32 to vector<2x1xf32>
    %349 = arith.divf %347, %348 : vector<2x1xf32>
    %350 = vector.broadcast %342 : vector<2x1xf32> to vector<2x64xf32>
    %351 = arith.subf %336, %350 : vector<2x64xf32>
    %cst_142 = arith.constant 9.99999997E-7 : f32
    %352 = vector.broadcast %cst_142 : f32 to vector<2x1xf32>
    %353 = arith.addf %349, %352 : vector<2x1xf32>
    %354 = math.rsqrt %353 : vector<2x1xf32>
    %355 = vector.broadcast %354 : vector<2x1xf32> to vector<2x64xf32>
    %356 = arith.mulf %351, %355 : vector<2x64xf32>
    %357 = vector.broadcast %337 : vector<1x64xf32> to vector<2x64xf32>
    %358 = arith.mulf %356, %357 : vector<2x64xf32>
    %359 = vector.broadcast %338 : vector<1x64xf32> to vector<2x64xf32>
    %360 = arith.addf %358, %359 : vector<2x64xf32>
    %361 = arith.truncf %360 : vector<2x64xf32> to vector<2x64xbf16>
    %c0_143 = arith.constant 0 : index
    %c0_144 = arith.constant 0 : index
    %362 = vector.load %arg18[%c0_143, %c0_144] : memref<64x128xbf16, #tpu.memory_space<vmem>>, vector<64x128xbf16>
    %cst_145 = arith.constant dense<0.000000e+00> : vector<2x128xf32>
    %363 = tpu.matmul %361, %362, %cst_145 {dimension_numbers = #tpu.dot_dimension_numbers<[1], [0], [0], [1], [0, 0, 1, 1], [], []>} : vector<2x64xbf16>, vector<64x128xbf16>, vector<2x128xf32> -> vector<2x128xf32>
    %c0_146 = arith.constant 0 : index
    %c0_147 = arith.constant 0 : index
    %364 = vector.load %arg19[%c0_146, %c0_147] : memref<1x128xf32, #tpu.memory_space<vmem>>, vector<1x128xf32>
    %365 = vector.broadcast %364 : vector<1x128xf32> to vector<2x128xf32>
    %366 = arith.addf %363, %365 : vector<2x128xf32>
    %c0_148 = arith.constant 0 : index
    %c0_149 = arith.constant 0 : index
    %367 = vector.load %arg20[%c0_148, %c0_149] : memref<2x128xf32, #tpu.memory_space<vmem>>, vector<2x128xf32>
    tpu.vector_store %arg20[%c0_148, %c0_149], %366 {strides = array<i32>} : memref<2x128xf32, #tpu.memory_space<vmem>>, vector<2x128xf32>,
    return
  }
  func.func @transform_0(%arg0: i32) -> (i32, i32, i32) {
    %c0_i32 = arith.constant 0 : i32
    %c0_i32_0 = arith.constant 0 : i32
    %c0_i32_1 = arith.constant 0 : i32
    return %arg0, %c0_i32, %c0_i32_0 : i32, i32, i32
  }
  func.func @transform_1(%arg0: i32) -> (i32, i32) {
    %c0_i32 = arith.constant 0 : i32
    %c0_i32_0 = arith.constant 0 : i32
    %c0_i32_1 = arith.constant 0 : i32
    return %c0_i32, %c0_i32_0 : i32, i32
  }
  func.func @transform_2(%arg0: i32) -> (i32, i32) {
    %c0_i32 = arith.constant 0 : i32
    %c0_i32_0 = arith.constant 0 : i32
    %c0_i32_1 = arith.constant 0 : i32
    return %c0_i32, %c0_i32_0 : i32, i32
  }
  func.func @transform_3(%arg0: i32) -> (i32, i32, i32) {
    %c0_i32 = arith.constant 0 : i32
    %c0_i32_0 = arith.constant 0 : i32
    %c0_i32_1 = arith.constant 0 : i32
    %c0_i32_2 = arith.constant 0 : i32
    return %c0_i32, %c0_i32_0, %c0_i32_1 : i32, i32, i32
  }
  func.func @transform_4(%arg0: i32) -> (i32, i32, i32) {
    %c0_i32 = arith.constant 0 : i32
    %c0_i32_0 = arith.constant 0 : i32
    %c0_i32_1 = arith.constant 0 : i32
    %c0_i32_2 = arith.constant 0 : i32
    return %c0_i32, %c0_i32_0, %c0_i32_1 : i32, i32, i32
  }
  func.func @transform_5(%arg0: i32) -> (i32, i32, i32) {
    %c0_i32 = arith.constant 0 : i32
    %c0_i32_0 = arith.constant 0 : i32
    %c0_i32_1 = arith.constant 0 : i32
    %c0_i32_2 = arith.constant 0 : i32
    return %c0_i32, %c0_i32_0, %c0_i32_1 : i32, i32, i32
  }
  func.func @transform_6(%arg0: i32) -> (i32, i32, i32) {
    %c0_i32 = arith.constant 0 : i32
    %c0_i32_0 = arith.constant 0 : i32
    %c0_i32_1 = arith.constant 0 : i32
    %c0_i32_2 = arith.constant 0 : i32
    return %c0_i32, %c0_i32_0, %c0_i32_1 : i32, i32, i32
  }
  func.func @transform_7(%arg0: i32) -> (i32, i32, i32) {
    %c0_i32 = arith.constant 0 : i32
    %c0_i32_0 = arith.constant 0 : i32
    %c0_i32_1 = arith.constant 0 : i32
    %c0_i32_2 = arith.constant 0 : i32
    return %c0_i32, %c0_i32_0, %c0_i32_1 : i32, i32, i32
  }
  func.func @transform_8(%arg0: i32) -> (i32, i32, i32) {
    %c0_i32 = arith.constant 0 : i32
    %c0_i32_0 = arith.constant 0 : i32
    %c0_i32_1 = arith.constant 0 : i32
    %c0_i32_2 = arith.constant 0 : i32
    return %c0_i32, %c0_i32_0, %c0_i32_1 : i32, i32, i32
  }
  func.func @transform_9(%arg0: i32) -> (i32, i32, i32) {
    %c0_i32 = arith.constant 0 : i32
    %c0_i32_0 = arith.constant 0 : i32
    %c0_i32_1 = arith.constant 0 : i32
    %c0_i32_2 = arith.constant 0 : i32
    return %c0_i32, %c0_i32_0, %c0_i32_1 : i32, i32, i32
  }
  func.func @transform_10(%arg0: i32) -> (i32, i32, i32) {
    %c0_i32 = arith.constant 0 : i32
    %c0_i32_0 = arith.constant 0 : i32
    %c0_i32_1 = arith.constant 0 : i32
    %c0_i32_2 = arith.constant 0 : i32
    return %c0_i32, %c0_i32_0, %c0_i32_1 : i32, i32, i32
  }
  func.func @transform_11(%arg0: i32) -> (i32, i32, i32) {
    %c0_i32 = arith.constant 0 : i32
    %c0_i32_0 = arith.constant 0 : i32
    %c0_i32_1 = arith.constant 0 : i32
    %c0_i32_2 = arith.constant 0 : i32
    return %c0_i32, %c0_i32_0, %c0_i32_1 : i32, i32, i32
  }
  func.func @transform_12(%arg0: i32) -> (i32, i32, i32) {
    %c0_i32 = arith.constant 0 : i32
    %c0_i32_0 = arith.constant 0 : i32
    %c0_i32_1 = arith.constant 0 : i32
    %c0_i32_2 = arith.constant 0 : i32
    return %c0_i32, %c0_i32_0, %c0_i32_1 : i32, i32, i32
  }
  func.func @transform_13(%arg0: i32) -> (i32, i32, i32) {
    %c0_i32 = arith.constant 0 : i32
    %c0_i32_0 = arith.constant 0 : i32
    %c0_i32_1 = arith.constant 0 : i32
    %c0_i32_2 = arith.constant 0 : i32
    return %c0_i32, %c0_i32_0, %c0_i32_1 : i32, i32, i32
  }
  func.func @transform_14(%arg0: i32) -> (i32, i32, i32) {
    %c0_i32 = arith.constant 0 : i32
    %c0_i32_0 = arith.constant 0 : i32
    %c0_i32_1 = arith.constant 0 : i32
    %c0_i32_2 = arith.constant 0 : i32
    return %c0_i32, %c0_i32_0, %c0_i32_1 : i32, i32, i32
  }
  func.func @transform_15(%arg0: i32) -> (i32, i32) {
    %c0_i32 = arith.constant 0 : i32
    %c0_i32_0 = arith.constant 0 : i32
    %c0_i32_1 = arith.constant 0 : i32
    return %c0_i32, %c0_i32_0 : i32, i32
  }
  func.func @transform_16(%arg0: i32) -> (i32, i32) {
    %c0_i32 = arith.constant 0 : i32
    %c0_i32_0 = arith.constant 0 : i32
    %c0_i32_1 = arith.constant 0 : i32
    return %c0_i32, %c0_i32_0 : i32, i32
  }
  func.func @transform_17(%arg0: i32) -> (i32, i32) {
    %c0_i32 = arith.constant 0 : i32
    %c0_i32_0 = arith.constant 0 : i32
    %c0_i32_1 = arith.constant 0 : i32
    return %c0_i32, %c0_i32_0 : i32, i32
  }
  func.func @transform_18(%arg0: i32) -> (i32, i32) {
    %c0_i32 = arith.constant 0 : i32
    %c0_i32_0 = arith.constant 0 : i32
    %c0_i32_1 = arith.constant 0 : i32
    return %c0_i32, %c0_i32_0 : i32, i32
  }
  func.func @transform_19(%arg0: i32) -> (i32, i32) {
    %c0_i32 = arith.constant 0 : i32
    %c0_i32_0 = arith.constant 0 : i32
    return %arg0, %c0_i32 : i32, i32
  }
}

</mosaic_0001>

<bundles_post_ra>
// kernel: vit_forward.1
= control target key start
LH: loop header
LB: loop body
LE: loop exit
PB: predicated region body
PF: predicated region fallthrough
CT: control target
= control target key end

     0   :  { %s6521_s0 = inlined_call_operand.vmem [shape: bf16[2,4,768], index: 0, kind: input, shape index: {}]   ;;  %s6522_s1 = inlined_call_operand.vmem [shape: bf16[768,64], index: 1, kind: input, shape index: {}]   ;;  %s6523_s2 = inlined_call_operand.vmem [shape: f32[8,64], index: 2, kind: input, shape index: {}]   ;;  %s6524_s3 = inlined_call_operand.vmem [shape: f32[2,1,64], index: 3, kind: input, shape index: {}, may-alias: {3,9}]   ;;  %s6525_s4 = inlined_call_operand.vmem [shape: f32[2,1,64], index: 4, kind: input, shape index: {}, may-alias: {4,8,10,14}]   ;;  %s6526_s5 = inlined_call_operand.vmem [shape: bf16[2,64,192], index: 5, kind: input, shape index: {}]   ;;  %s6527_s6 = inlined_call_operand.vmem [shape: f32[2,1,192], index: 6, kind: input, shape index: {}]   ;;  %s6528_s7 = inlined_call_operand.vmem [shape: bf16[2,64,64], index: 7, kind: input, shape index: {}]   ;;  %s6529_s8 = inlined_call_operand.vmem [shape: f32[2,1,64], index: 8, kind: input, shape index: {}, may-alias: {4,8,10,14}]   ;;  %s6530_s9 = inlined_call_operand.vmem [shape: f32[2,1,64], index: 9, kind: input, shape index: {}, may-alias: {3,9}]   ;;  %s6531_s10 = inlined_call_operand.vmem [shape: f32[2,1,64], index: 10, kind: input, shape index: {}, may-alias: {4,8,10,14}]   ;;  %s6532_s11 = inlined_call_operand.vmem [shape: bf16[2,64,128], index: 11, kind: input, shape index: {}]   ;;  %s6533_s12 = inlined_call_operand.vmem [shape: f32[2,1,128], index: 12, kind: input, shape index: {}]   ;;  %s6534_s13 = inlined_call_operand.vmem [shape: bf16[2,128,64], index: 13, kind: input, shape index: {}]   ;;  %s6535_s14 = inlined_call_operand.vmem [shape: f32[2,1,64], index: 14, kind: input, shape index: {}, may-alias: {4,8,10,14}]   ;;  %s6536_s15 = inlined_call_operand.vmem [shape: f32[1,64], index: 15, kind: input, shape index: {}]   ;;  %s6537_s16 = inlined_call_operand.vmem [shape: f32[1,64], index: 16, kind: input, shape index: {}]   ;;  %s6538_s17 = inlined_call_operand.vmem [shape: bf16[64,128], index: 17, kind: input, shape index: {}]   ;;  %s6539_s18 = inlined_call_operand.vmem [shape: f32[1,128], index: 18, kind: input, shape index: {}]   ;;  %s6540_s19 = inlined_call_operand.hbm [shape: f32[2,128], index: 19, kind: output, shape index: {}]  }
   0x1   :  { %6547 = sst [smem:[#allocation6_spill]] %s6521_s0 }
   0x2   :  { %6548 = sst [smem:[#allocation7_spill]] %s6522_s1 }
   0x3   :  { %6549 = sst [smem:[#allocation8_spill]] %s6523_s2 }
   0x4   :  { %6550 = sst [smem:[#allocation9_spill]] %s6524_s3 }
   0x5   :  { %s6551_s20 = sld [smem:[#allocation7_spill]]  ;;  %v5572_v2 = vmov 0   ;;  %s6552_s26 = sld [smem:[#allocation6_spill]] }
   0x6   :  { %64 = vst [vmem:[#allocation2] sm:$0xff] %v5572_v2  ;;  %67 = vst [vmem:[#allocation2 + $0x18] sm:$0xff] %v5572_v2 }
   0x7   :  { %65 = vst [vmem:[#allocation2 + $0x8] sm:$0xff] %v5572_v2  ;;  %66 = vst [vmem:[#allocation2 + $0x10] sm:$0xff] %v5572_v2 }
   0x8   :  { %68 = vst [vmem:[#allocation2 + $0x20] sm:$0xff] %v5572_v2  ;;  %69 = vst [vmem:[#allocation2 + $0x28] sm:$0xff] %v5572_v2 }
   0xb   :  { %v5341_v0 = vld [vmem:[%s6551_s20 + $0x40] sm:$0xff]   ;;  %v5345_v5 = vld [vmem:[%s6551_s20 + $0x48] sm:$0xff]   ;;  %v5349_v9 = vld [vmem:[%s6551_s20 + $0x50] sm:$0xff]  }
   0xc   :  { %v5342_v1 = vld [vmem:[%s6551_s20 + $0xc0] sm:$0xff]   ;;  %4853 = vmatprep.subr.bf16.mxu0 %v5341_v0  ;;  %v5346_v6 = vld [vmem:[%s6551_s20 + $0xc8] sm:$0xff]   ;;  %v5350_v10 = vld [vmem:[%s6551_s20 + $0xd0] sm:$0xff]  }
   0xd   :  { %v5343_v3 = vld [vmem:[%s6551_s20] sm:$0xff]   ;;  %4875 = vmatprep.subr.bf16.mxu1 %v5342_v1  ;;  %v5347_v7 = vld [vmem:[%s6551_s20 + $0x8] sm:$0xff]   ;;  %v5351_v11 = vld [vmem:[%s6551_s20 + $0x10] sm:$0xff]  }
   0xe   :  { %v5344_v4 = vld [vmem:[%s6551_s20 + $0x80] sm:$0xff]   ;;  %4854 = vmatpush3.bf16.msra.mxu0 %v5343_v3  ;;  %v5348_v8 = vld [vmem:[%s6551_s20 + $0x88] sm:$0xff]   ;;  %v5352_v12 = vld [vmem:[%s6551_s20 + $0x90] sm:$0xff]  }
   0xf   :  { %4876 = vmatpush3.bf16.msra.mxu1 %v5344_v4  ;;  %4855 = vmatprep.subr.bf16.mxu0 %v5345_v5  ;;  %v5353_v13 = vld [vmem:[%s6551_s20 + $0x58] sm:$0xff]   ;;  %v5357_v17 = vld [vmem:[%s6551_s20 + $0x60] sm:$0xff]   ;;  %v5361_v21 = vld [vmem:[%s6551_s20 + $0x68] sm:$0xff]  }
  0x10   :  { %4877 = vmatprep.subr.bf16.mxu1 %v5346_v6  ;;  %v5354_v14 = vld [vmem:[%s6551_s20 + $0xd8] sm:$0xff]   ;;  %v5358_v18 = vld [vmem:[%s6551_s20 + $0xe0] sm:$0xff]   ;;  %v5362_v22 = vld [vmem:[%s6551_s20 + $0xe8] sm:$0xff]  }
  0x11   :  { %v5355_v15 = vld [vmem:[%s6551_s20 + $0x18] sm:$0xff]   ;;  %v5359_v19 = vld [vmem:[%s6551_s20 + $0x20] sm:$0xff]   ;;  %v5363_v23 = vld [vmem:[%s6551_s20 + $0x28] sm:$0xff]  }
  0x12   :  { %4856 = vmatpush3.bf16.msra.mxu0 %v5347_v7  ;;  %v5356_v16 = vld [vmem:[%s6551_s20 + $0x98] sm:$0xff]   ;;  %v5360_v20 = vld [vmem:[%s6551_s20 + $0xa0] sm:$0xff]   ;;  %v5364_v24 = vld [vmem:[%s6551_s20 + $0xa8] sm:$0xff]  }
  0x13   :  { %4878 = vmatpush3.bf16.msra.mxu1 %v5348_v8  ;;  %4857 = vmatprep.subr.bf16.mxu0 %v5349_v9  ;;  %v5365_v25 = vld [vmem:[%s6551_s20 + $0x70] sm:$0xff]   ;;  %v5369_v29 = vld [vmem:[%s6551_s20 + $0x78] sm:$0xff]   ;;  %v70_v33 = vld [vmem:[%s6552_s26] sm:$0xff] }
  0x14   :  { %4879 = vmatprep.subr.bf16.mxu1 %v5350_v10  ;;  %v5366_v26 = vld [vmem:[%s6551_s20 + $0xf0] sm:$0xff]   ;;  %v5370_v30 = vld [vmem:[%s6551_s20 + $0xf8] sm:$0xff]   ;;  %4621 = vst.sshfl [vmem:[#allocation2] sm:$0xf pattern:$0x76325410] %v70_v33  ;;  %v78_v35 = vcombine.high %v70_v33, %v70_v33 }
  0x15   :  { %v5367_v27 = vld [vmem:[%s6551_s20 + $0x30] sm:$0xff]   ;;  %v5371_v31 = vld [vmem:[%s6551_s20 + $0x38] sm:$0xff]   ;;  %v5379_v37 = vld [vmem:[%s6551_s20 + $0x140] sm:$0xff]  }
  0x16   :  { %4858 = vmatpush3.bf16.msra.mxu0 %v5351_v11  ;;  %v5368_v28 = vld [vmem:[%s6551_s20 + $0xb0] sm:$0xff]   ;;  %v5372_v32 = vld [vmem:[%s6551_s20 + $0xb8] sm:$0xff]   ;;  %4622 = vst.sshfl [vmem:[#allocation2 + $0x8] sm:$0xf pattern:$0x76325410] %v78_v35 }
  0x17   :  { %4880 = vmatpush3.bf16.msra.mxu1 %v5352_v12  ;;  %4859 = vmatprep.subr.bf16.mxu0 %v5353_v13  ;;  %v72_v34 = vld [vmem:[%s6552_s26 + $0xc] sm:$0xff]  ;;  %v5380_v38 = vld [vmem:[%s6551_s20 + $0x100] sm:$0xff]   ;;  %v5385_v47 = vld [vmem:[%s6551_s20 + $0x158] sm:$0xff]  }
  0x18   :  { %4881 = vmatprep.subr.bf16.mxu1 %v5354_v14  ;;  %4623 = vst.sshfl [vmem:[#allocation2 + $0x18] sm:$0xf pattern:$0x76325410] %v72_v34  ;;  %v100_v36 = vcombine.high %v72_v34, %v72_v34  ;;  %v5381_v41 = vld [vmem:[%s6551_s20 + $0x148] sm:$0xff]   ;;  %v5383_v45 = vld [vmem:[%s6551_s20 + $0x150] sm:$0xff]  }
  0x19   :  { %v5382_v44 = vld [vmem:[%s6551_s20 + $0x108] sm:$0xff]   ;;  %v5384_v46 = vld [vmem:[%s6551_s20 + $0x110] sm:$0xff]   ;;  %v5386_v48 = vld [vmem:[%s6551_s20 + $0x118] sm:$0xff]  }
  0x1a   :  { %4860 = vmatpush3.bf16.msra.mxu0 %v5355_v15  ;;  %4624 = vst.sshfl [vmem:[#allocation2 + $0x20] sm:$0xf pattern:$0x76325410] %v100_v36  ;;  %v5387_v50 = vld [vmem:[%s6551_s20 + $0x160] sm:$0xff]   ;;  %v5389_v53 = vld [vmem:[%s6551_s20 + $0x168] sm:$0xff]  }
  0x1b   :  { %4882 = vmatpush3.bf16.msra.mxu1 %v5356_v16  ;;  %4861 = vmatprep.subr.bf16.mxu0 %v5357_v17  ;;  %v4619_v49 = vld.sshfl [vmem:[%s6552_s26 + $0x8] sm:$0x33 pattern:$0x76325410]  ;;  %v5388_v52 = vld [vmem:[%s6551_s20 + $0x120] sm:$0xff]   ;;  %v5391_v55 = vld [vmem:[%s6551_s20 + $0x170] sm:$0xff]  }
  0x1c   :  { %4883 = vmatprep.subr.bf16.mxu1 %v5358_v18  ;;  %v4620_v51 = vld.sshfl [vmem:[%s6552_s26 + $0x14] sm:$0x33 pattern:$0x76325410]  ;;  %130 = vst [vmem:[#allocation2 + $0x10] sm:$0x33] %v4619_v49 }
  0x1d   :  { %133 = vst [vmem:[#allocation2 + $0x28] sm:$0x33] %v4620_v51  ;;  %v5390_v54 = vld [vmem:[%s6551_s20 + $0x128] sm:$0xff]   ;;  %v5392_v57 = vld [vmem:[%s6551_s20 + $0x130] sm:$0xff]   ;;  %v5393_v58 = vld [vmem:[%s6551_s20 + $0x178] sm:$0xff]  }
  0x1e   :  { %4862 = vmatpush3.bf16.msra.mxu0 %v5359_v19  ;;  %v5394_v59 = vld [vmem:[%s6551_s20 + $0x138] sm:$0xff]  }
  0x1f   :  { %4884 = vmatpush3.bf16.msra.mxu1 %v5360_v20  ;;  %4863 = vmatprep.subr.bf16.mxu0 %v5361_v21  ;;  %v5373_v39 = vld [vmem:[#allocation2] ss:$24 sps:$4 sm:$0xff]   ;;  %v5375_v40 = vld [vmem:[#allocation2 + $0x4] ss:$24 sps:$4 sm:$0xff]  }
  0x20   :  { %4885 = vmatprep.subr.bf16.mxu1 %v5362_v22  ;;  %586 = vmatprep.mubr.bf16.mxu0 %v5375_v40 }
  0x21   :  { %v5376_v42 = vld [vmem:[#allocation2 + $0x8] ss:$24 sps:$4 sm:$0xff]   ;;  %v5378_v43 = vld [vmem:[#allocation2 + $0xc] ss:$24 sps:$4 sm:$0xff]  }
  0x22   :  { %4864 = vmatpush3.bf16.msra.mxu0 %v5363_v23  ;;  %627 = vmatprep.mubr.bf16.mxu1 %v5378_v43 }
  0x23   :  { %4886 = vmatpush3.bf16.msra.mxu1 %v5364_v24  ;;  %4865 = vmatprep.subr.bf16.mxu0 %v5365_v25 }
  0x24   :  { %4887 = vmatprep.subr.bf16.mxu1 %v5366_v26  ;;  %v5397_v56 = vld [vmem:[#allocation2 + $0x14] ss:$24 sps:$4 sm:$0xff]   ;;  %v5395_v60 = vld [vmem:[#allocation2 + $0x10] ss:$24 sps:$4 sm:$0xff]  }
  0x26   :  { %4866 = vmatpush3.bf16.msra.mxu0 %v5367_v27 }
  0x27   :  { %4888 = vmatpush3.bf16.msra.mxu1 %v5368_v28  ;;  %4867 = vmatprep.subr.bf16.mxu0 %v5369_v29 }
  0x28   :  { %4889 = vmatprep.subr.bf16.mxu1 %v5370_v30 }
  0x2a   :  { %4868 = vmatpush3.bf16.msra.mxu0 %v5371_v31 }
  0x2b   :  { %4890 = vmatpush3.bf16.msra.mxu1 %v5372_v32  ;;  %4897 = vmatprep.subr.bf16.mxu0 %v5379_v37 }
  0x2d   :  { %587 = vmatmul.mubr.bf16.vlgmr.msra.gmra.mrb[0].mxu0 %v5373_v39 }
  0x2e   :  { %4898 = vmatpush3.bf16.msra.mxu0 %v5380_v38  ;;  %628 = vmatmul.mubr.bf16.vlgmr.msra.gmra.mrb[0].mxu1 %v5376_v42 }
  0x2f   :  { %4899 = vmatprep.subr.bf16.mxu0 %v5381_v41  ;;  %825 = vmatprep.mubr.bf16.mxu1 %v5572_v2 }
  0x30   :  { %668 = vmatprep.mubr.bf16.mxu0 %v5397_v56 }
  0x32   :  { %4900 = vmatpush3.bf16.msra.mxu0 %v5382_v44 }
  0x33   :  { %4901 = vmatprep.subr.bf16.mxu0 %v5383_v45 }
  0x36   :  { %4902 = vmatpush3.bf16.msra.mxu0 %v5384_v46 }
  0x37   :  { %4903 = vmatprep.subr.bf16.mxu0 %v5385_v47 }
  0x3a   :  { %4904 = vmatpush3.bf16.msra.mxu0 %v5386_v48 }
  0x3b   :  { %4905 = vmatprep.subr.bf16.mxu0 %v5387_v50 }
  0x3e   :  { %4906 = vmatpush3.bf16.msra.mxu0 %v5388_v52 }
  0x3f   :  { %4907 = vmatprep.subr.bf16.mxu0 %v5389_v53 }
  0x42   :  { %4908 = vmatpush3.bf16.msra.mxu0 %v5390_v54 }
  0x43   :  { %4909 = vmatprep.subr.bf16.mxu0 %v5391_v55 }
  0x46   :  { %4910 = vmatpush3.bf16.msra.mxu0 %v5392_v57 }
  0x47   :  { %4911 = vmatprep.subr.bf16.mxu0 %v5393_v58 }
  0x4a   :  { %4912 = vmatpush3.bf16.msra.mxu0 %v5394_v59 }
  0x4d   :  { %669 = vmatmul.mubr.bf16.vlgmr.msra.gmra.mrb[4].mxu0 %v5395_v60 }
  0x4e   :  { %24 = vsyncpa [#allocation4], 0  ;;  %s6553_s3 = sld [smem:[#allocation8_spill]]  ;;  %vm685_vm0 = vcmask 523264   ;;  %v5400_v35 = vld [vmem:[%s6526_s5 + $0x4] ss:$8 sps:$4 sm:$0xff]   ;;  %v680_v60 = vlaneseq }
  0x4f   :  { %v5398_v36 = vld [vmem:[%s6526_s5] ss:$8 sps:$4 sm:$0xff]   ;;  %793 = vmatprep.subr.bf16.mxu1 %v5400_v35  ;;  %v5403_v37 = vld [vmem:[%s6526_s5 + $0x14] ss:$8 sps:$4 sm:$0xff]   ;;  %v5401_v38 = vld [vmem:[%s6526_s5 + $0x10] ss:$8 sps:$4 sm:$0xff]  }
  0x50   :  { %794 = vmatpush1.bf16.msra.mxu1 %v5398_v36  ;;  %v5406_v39 = vld [vmem:[%s6526_s5 + $0x24] ss:$8 sps:$4 sm:$0xff]   ;;  %v5404_v40 = vld [vmem:[%s6526_s5 + $0x20] ss:$8 sps:$4 sm:$0xff]   ;;  %v5409_v41 = vld [vmem:[%s6526_s5 + $0x34] ss:$8 sps:$4 sm:$0xff]  }
  0x51   :  { %795 = vmatprep.subr.bf16.mxu1 %v5403_v37  ;;  %v5407_v42 = vld [vmem:[%s6526_s5 + $0x30] ss:$8 sps:$4 sm:$0xff]   ;;  %s6554_s0 = sld [smem:[#allocation9_spill]]  ;;  %v4680_v55 = vld [vmem:[%s6525_s4] ss:$0 sm:$0xff]  ;;  %vm5574_vm1 = vmmov 0  }
  0x52   :  { %s5575_s22 = smov 112   ;;  %s5576_s2 = smov 80   ;;  %vm872_vm2 = vcmask 130048   ;;  %vm1489_vm4 = vcmask 64512   ;;  %vm2188_vm5 = vcmask 261120   ;;  %vm2191_vm6 = vcmask 392192  }
  0x53   :  { %s5577_s23 = smov 96   ;;  %s5578_s24 = smov 64   ;;  %vm4493_vm8 = vcmask 517120  }
  0x54   :  { %v677_v17 = vld [vmem:[%s6553_s3] sm:$0xff]  ;;  %796 = vmatpush1.bf16.msra.mxu1 %v5401_v38  ;;  %s6546_s28 = smov 16   ;;  %s6545_s1 = smov 32  }
  0x55   :  { %797 = vmatprep.subr.bf16.mxu1 %v5406_v39  ;;  %s6544_s20 = smov 48   ;;  %s6556_s30 = smov 32  }
  0x57   :  { %v4679_v51 = vld [vmem:[%s6554_s0] ss:$0 sm:$0xff] }
  0x58   :  { %798 = vmatpush1.bf16.msra.mxu1 %v5404_v40 }
  0x59   :  { %799 = vmatprep.subr.bf16.mxu1 %v5409_v41 }
  0x5c   :  { %800 = vmatpush1.bf16.msra.mxu1 %v5407_v42 }
 0x100   :  { %v4869_v61 = vpop.f32.mrb[0].mxu0 }
 0x101   :  { %v4870_v62 = vpop.f32.mrb[1].mxu0  ;;  %v4891_v63 = vpop.f32.mrb[0].mxu1 }
 0x102   :  { %v4871_v0 = vadd.f32 %v4870_v62, %v4869_v61  ;;  %v4872_v1 = vpop.f32.mrb[2].mxu0  ;;  %v4892_v3 = vpop.f32.mrb[1].mxu1  ;;  %v5894_v61 = vshrl.u32 %v680_v60, 7 }
 0x103   :  { %v4873_v4 = vpop.f32.mrb[3].mxu0  ;;  %v4893_v5 = vadd.f32 %v4892_v3, %v4891_v63  ;;  %v4894_v6 = vpop.f32.mrb[2].mxu1  ;;  %v738_v63 = vld [vmem:[%s6527_s6] sm:$0x3] }
 0x104   :  { %v4874_v7 = vadd.f32 %v4873_v4, %v4872_v1  ;;  %v4895_v8 = vpop.f32.mrb[3].mxu1  ;;  %v742_v62 = vsub.s32 0, %v5894_v61  ;;  %v5573_v1 = vmov 0.0  }
 0x105   :  { %v630_v9 = vadd.f32 %v4893_v5, %v4871_v0  ;;  %v4896_v10 = vadd.f32 %v4895_v8, %v4894_v6  ;;  %5029 = vmatprep.subr.mxu1 %v5573_v1  ;;  %5059 = vmatprep.subr.mxu0 %v5573_v1 }
 0x106   :  { %v743_v0 = vrot.slane %v738_v63, %v742_v62  ;;  %5061 = vmatprep.mubr.msk.f32.mxu0 %vm5574_vm1, %v5573_v1 }
 0x107   :  { %v633_v11 = vadd.f32 %v4896_v10, %v4874_v7 }
 0x120   :  { %v4913_v12 = vpop.f32.mrb[4].mxu0 }
 0x121   :  { %v4914_v13 = vpop.f32.mrb[5].mxu0 }
 0x122   :  { %v4915_v14 = vadd.f32 %v4914_v13, %v4913_v12  ;;  %v4916_v15 = vpop.f32.mrb[6].mxu0 }
 0x123   :  { %v4917_v16 = vpop.f32.mrb[7].mxu0 }
 0x124   :  { %v671_v18 = vadd.f32 %v4915_v14, %v630_v9  ;;  %v4918_v19 = vadd.f32 %v4917_v16, %v4916_v15 }
 0x126   :  { %v674_v20 = vadd.f32 %v4918_v19, %v633_v11  ;;  %v5850_v21 = vadd.f32 %v677_v17, %v671_v18  ;;  %v746_v19 = vsub.s32 1, %v5894_v61 }
 0x128   :  { %v5852_v22 = vadd.f32 %v677_v17, %v674_v20  ;;  %v686_v23 = vsel %vm685_vm0, %v5850_v21, 0.0 }
 0x129   :  { %687 = vadd.xlane.f32.xlu0 %v686_v23  ;;  %v747_v23 = vrot.slane %v738_v63, %v746_v19 }
 0x12a   :  { %v689_v24 = vsel %vm685_vm0, %v5852_v22, 0.0 }
 0x12d   :  { %690 = vadd.xlane.f32.xlu0 %v689_v24 }
 0x1b6   :  { %v688_v25 = vpop.xlane.xlu0 %687 }
 0x1b7   :  { %v693_v26 = vmul.f32 0.015625, %v688_v25 }
 0x1b9   :  { %v695_v27 = vsub.f32 %v5850_v21, %v693_v26 }
 0x1ba   :  { %v691_v28 = vpop.xlane.xlu0 %690 }
 0x1bb   :  { %v694_v29 = vmul.f32 0.015625, %v691_v28  ;;  %v697_v30 = vmul.f32 %v695_v27, %v695_v27 }
 0x1bd   :  { %v696_v31 = vsub.f32 %v5852_v22, %v694_v29  ;;  %v699_v32 = vsel %vm685_vm0, %v697_v30, 0.0  ;;  %v5977_v29 = vand.u32 127, %v680_v60 }
 0x1be   :  { %700 = vadd.xlane.f32.xlu1 %v699_v32 }
 0x1bf   :  { %v698_v33 = vmul.f32 %v696_v31, %v696_v31  ;;  %vm682_vm3 = vcmp.lt.s32.totalorder %v5977_v29, 5 }
 0x1c1   :  { %v702_v34 = vsel %vm685_vm0, %v698_v33, 0.0 }
 0x1c2   :  { %703 = vadd.xlane.f32.xlu1 %v702_v34 }
 0x24b   :  { %v701_v43 = vpop.xlane.xlu1 %700 }
 0x24c   :  { %v705_v44 = vmul.f32 0.015625, %v701_v43 }
 0x24e   :  { %v707_v45 = vadd.f32 1e-06, %v705_v44 }
 0x24f   :  { %v704_v46 = vpop.xlane.xlu1 %703 }
 0x250   :  { %5458 = vrsqrt.f32 %v707_v45  ;;  %v706_v47 = vmul.f32 0.015625, %v704_v46 }
 0x252   :  { %v708_v48 = vadd.f32 1e-06, %v706_v47 }
 0x254   :  { %5460 = vrsqrt.f32 %v708_v48 }
 0x25a   :  { %v5459_v49 = vpop.eup %5458 }
 0x25b   :  { %v711_v50 = vmul.f32 %v5459_v49, %v695_v27 }
 0x25d   :  { %v719_v53 = vmul.f32 %v4679_v51, %v711_v50 }
 0x25e   :  { %v5461_v52 = vpop.eup %5460 }
 0x25f   :  { %v712_v54 = vmul.f32 %v5461_v52, %v696_v31  ;;  %v727_v57 = vadd.f32 %v4680_v55, %v719_v53 }
 0x261   :  { %v720_v56 = vmul.f32 %v4679_v51, %v712_v54 }
 0x263   :  { %v728_v58 = vadd.f32 %v4680_v55, %v720_v56 }
 0x265   :  { %v729_v59 = vpack.c.bf16 %v728_v58, %v727_v57 }
 0x267   :  { %4689 = vmatmul.mubr.msk.bf16.vlgmr.msra.gmra.mrb[4].mxu1 %vm685_vm0, %v729_v59 }
 0x268   :  { %5031 = vmatprep.mubr.msk.f32.mxu1 %vm5574_vm1, %v5573_v1 }
 0x33a   :  { %v827_v3 = vpop.f32.mrb[4].mxu1 }
 0x33b   :  { %v828_v4 = vadd.f32 %v827_v3, %v743_v0  ;;  %v829_v5 = vpop.f32.mrb[5].mxu1 }
 0x33c   :  { %v831_v6 = vpop.f32.mrb[6].mxu1  ;;  %v5952_v26 = vadd.f32 %v829_v5, %v747_v23 }
 0x33d   :  { %v832_v7 = vadd.f32 %v831_v6, %v743_v0  ;;  %v5908_v8 = vpop.f32.mrb[7].mxu1  ;;  %838 = vrot.lane.b32.xlu0 %v828_v4, %s5575_s22 }
 0x33e   :  { %v5969_v28 = vadd.f32 %v5908_v8, %v747_v23 }
 0x33f   :  { %840 = vrot.lane.b32.xlu1 %v832_v7, %s5575_s22 }
 0x341   :  { %846 = vrot.lane.b32.xlu0 %v828_v4, %s5576_s2 }
 0x343   :  { %842 = vrot.lane.b32.xlu1 %v828_v4, %s5577_s23 }
 0x345   :  { %870 = vrot.lane.b32.xlu0 %v828_v4, %s5578_s24 }
 0x347   :  { %844 = vrot.lane.b32.xlu1 %v832_v7, %s5577_s23 }
 0x34b   :  { %848 = vrot.lane.b32.xlu1 %v832_v7, %s5576_s2 }
 0x34f   :  { %947 = vrot.lane.b32.xlu1 %v832_v7, %s5578_s24 }
 0x3af   :  { %v839_v9 = vpop.permute.xlu0 %838 }
 0x3b0   :  { %1023 = vrot.lane.b32.xlu0 %v839_v9, %s5578_s24 }
 0x3b1   :  { %v841_v10 = vpop.permute.xlu1 %840 }
 0x3b2   :  { %1099 = vrot.lane.b32.xlu1 %v841_v10, %s5578_s24 }
 0x3b3   :  { %v847_v11 = vpop.permute.xlu0 %846 }
 0x3b5   :  { %v843_v12 = vpop.permute.xlu1 %842 }
 0x3b6   :  { %1175 = vrot.lane.b32.xlu0 %v843_v12, %s5578_s24 }
 0x3b7   :  { %v871_v13 = vpop.permute.xlu0 %870 }
 0x3b8   :  { %5030 = vmatpush3.xpose.msk.msra.mxu1 %vm872_vm2, %v871_v13 }
 0x3b9   :  { %v845_v14 = vpop.permute.xlu1 %844  ;;  %5034 = vmatprep.subr.mxu1 %v5573_v1 }
 0x3ba   :  { %1251 = vrot.lane.b32.xlu1 %v845_v14, %s5578_s24  ;;  %1327 = vrot.lane.b32.xlu0 %v847_v11, %s5578_s24 }
 0x3bb   :  { %5032 = vmatmul.mubr.msk.f32.vlgmr.msra.gmra.mrb[8].mxu1 %vm872_vm2, %v828_v4 }
 0x3bc   :  { %5036 = vmatprep.mubr.msk.f32.mxu1 %vm5574_vm1, %v5573_v1 }
 0x3bd   :  { %v849_v15 = vpop.permute.xlu1 %848 }
 0x3be   :  { %1403 = vrot.lane.b32.xlu1 %v849_v15, %s5578_s24 }
 0x3c1   :  { %v948_v16 = vpop.permute.xlu1 %947 }
 0x3c2   :  { %5035 = vmatpush3.xpose.msk.msra.mxu1 %vm872_vm2, %v948_v16 }
 0x3c3   :  { %5039 = vmatprep.subr.mxu1 %v5573_v1 }
 0x3c5   :  { %5037 = vmatmul.mubr.msk.f32.vlgmr.msra.gmra.mrb[10].mxu1 %vm872_vm2, %v832_v7 }
 0x3c6   :  { %5041 = vmatprep.mubr.msk.f32.mxu1 %vm5574_vm1, %v5573_v1 }
 0x422   :  { %v1024_v17 = vpop.permute.xlu0 %1023 }
 0x423   :  { %5040 = vmatpush3.xpose.msk.msra.mxu1 %vm872_vm2, %v1024_v17 }
 0x424   :  { %5044 = vmatprep.subr.mxu1 %v5573_v1  ;;  %v1100_v18 = vpop.permute.xlu1 %1099 }
 0x426   :  { %5042 = vmatmul.mubr.msk.f32.vlgmr.msra.gmra.mrb[12].mxu1 %vm872_vm2, %v839_v9 }
 0x427   :  { %5045 = vmatpush3.xpose.msk.msra.mxu1 %vm872_vm2, %v1100_v18  ;;  %5046 = vmatprep.mubr.msk.f32.mxu1 %vm5574_vm1, %v5573_v1 }
 0x428   :  { %v1176_v20 = vpop.permute.xlu0 %1175  ;;  %5049 = vmatprep.subr.mxu1 %v5573_v1 }
 0x42a   :  { %5047 = vmatmul.mubr.msk.f32.vlgmr.msra.gmra.mrb[14].mxu1 %vm872_vm2, %v841_v10 }
 0x42b   :  { %5050 = vmatpush3.xpose.msk.msra.mxu1 %vm872_vm2, %v1176_v20  ;;  %5051 = vmatprep.mubr.msk.f32.mxu1 %vm5574_vm1, %v5573_v1 }
 0x42c   :  { %v1252_v24 = vpop.permute.xlu1 %1251  ;;  %v1328_v25 = vpop.permute.xlu0 %1327  ;;  %5054 = vmatprep.subr.mxu1 %v5573_v1 }
 0x42d   :  { %5060 = vmatpush3.xpose.msk.msra.mxu0 %vm872_vm2, %v1328_v25 }
 0x42e   :  { %5052 = vmatmul.mubr.msk.f32.vlgmr.msra.gmra.mrb[16].mxu1 %vm872_vm2, %v843_v12  ;;  %5069 = vmatprep.subr.mxu0 %v5573_v1 }
 0x42f   :  { %5055 = vmatpush3.xpose.msk.msra.mxu1 %vm872_vm2, %v1252_v24  ;;  %5056 = vmatprep.mubr.msk.f32.mxu1 %vm5574_vm1, %v5573_v1 }
 0x430   :  { %5062 = vmatmul.mubr.msk.f32.vlgmr.msra.gmra.mrb[8].mxu0 %vm872_vm2, %v847_v11  ;;  %5064 = vmatprep.subr.mxu1 %v5573_v1  ;;  %v1404_v27 = vpop.permute.xlu1 %1403 }
 0x431   :  { %5070 = vmatpush3.msra.mxu0 %v5952_v26  ;;  %5071 = vmatprep.mubr.msk.f32.mxu0 %vm5574_vm1, %v5573_v1 }
 0x432   :  { %5057 = vmatmul.mubr.msk.f32.vlgmr.msra.gmra.mrb[18].mxu1 %vm872_vm2, %v845_v14  ;;  %5079 = vmatprep.subr.mxu0 %v5573_v1 }
 0x433   :  { %5065 = vmatpush3.xpose.msk.msra.mxu1 %vm872_vm2, %v1404_v27  ;;  %5066 = vmatprep.mubr.msk.f32.mxu1 %vm5574_vm1, %v5573_v1 }
 0x434   :  { %5074 = vmatprep.subr.mxu1 %v5573_v1 }
 0x436   :  { %5067 = vmatmul.mubr.msk.f32.vlgmr.msra.gmra.mrb[20].mxu1 %vm872_vm2, %v849_v15 }
 0x437   :  { %5075 = vmatpush3.msra.mxu1 %v5969_v28  ;;  %5076 = vmatprep.mubr.msk.f32.mxu1 %vm5574_vm1, %v5573_v1 }
 0x438   :  { %5084 = vmatprep.subr.mxu1 %v5573_v1 }
 0x48e   :  { %v943_v30 = vpop.f32.mrb[8].mxu1 }
 0x48f   :  { %v1481_v31 = vsel %vm682_vm3, %v943_v30, -1e+30  ;;  %v5033_v32 = vpop.f32.mrb[9].mxu1 }
 0x490   :  { %v1490_v33 = vsel %vm1489_vm4, %v1481_v31, -inf }
 0x491   :  { %1491 = vmax.xlane.f32.xlu0 %v1490_v33 }
 0x498   :  { %v1019_v34 = vpop.f32.mrb[10].mxu1 }
 0x499   :  { %v1482_v35 = vsel %vm682_vm3, %v1019_v34, -1e+30  ;;  %v5038_v36 = vpop.f32.mrb[11].mxu1 }
 0x49a   :  { %v1493_v37 = vsel %vm1489_vm4, %v1482_v35, -inf }
 0x49b   :  { %1494 = vmax.xlane.f32.xlu1 %v1493_v37 }
 0x4f9   :  { %v1095_v38 = vpop.f32.mrb[12].mxu1 }
 0x4fa   :  { %v1483_v39 = vsel %vm682_vm3, %v1095_v38, -1e+30  ;;  %v5043_v40 = vpop.f32.mrb[13].mxu1 }
 0x4fb   :  { %v1496_v41 = vsel %vm1489_vm4, %v1483_v39, -inf }
 0x4fc   :  { %1497 = vmax.xlane.f32.xlu0 %v1496_v41 }
 0x4fd   :  { %v1171_v42 = vpop.f32.mrb[14].mxu1 }
 0x4fe   :  { %v1484_v43 = vsel %vm682_vm3, %v1171_v42, -1e+30  ;;  %v5048_v44 = vpop.f32.mrb[15].mxu1 }
 0x4ff   :  { %v1499_v45 = vsel %vm1489_vm4, %v1484_v43, -inf }
 0x500   :  { %1500 = vmax.xlane.f32.xlu0 %v1499_v45 }
 0x501   :  { %v1247_v46 = vpop.f32.mrb[16].mxu1 }
 0x502   :  { %v1485_v47 = vsel %vm682_vm3, %v1247_v46, -1e+30  ;;  %v5053_v48 = vpop.f32.mrb[17].mxu1 }
 0x503   :  { %v1399_v49 = vpop.f32.mrb[8].mxu0  ;;  %v1502_v50 = vsel %vm1489_vm4, %v1485_v47, -inf }
 0x504   :  { %v1487_v51 = vsel %vm682_vm3, %v1399_v49, -1e+30  ;;  %1503 = vmax.xlane.f32.xlu0 %v1502_v50  ;;  %v5063_v52 = vpop.f32.mrb[9].mxu0 }
 0x505   :  { %v1323_v53 = vpop.f32.mrb[18].mxu1  ;;  %v1508_v57 = vsel %vm1489_vm4, %v1487_v51, -inf }
 0x506   :  { %v1486_v54 = vsel %vm682_vm3, %v1323_v53, -1e+30  ;;  %v5058_v55 = vpop.f32.mrb[19].mxu1 }
 0x507   :  { %v1505_v56 = vsel %vm1489_vm4, %v1486_v54, -inf }
 0x508   :  { %1506 = vmax.xlane.f32.xlu1 %v1505_v56  ;;  %1509 = vmax.xlane.f32.xlu0 %v1508_v57 }
 0x509   :  { %v1475_v58 = vpop.f32.mrb[20].mxu1 }
 0x50a   :  { %v1488_v59 = vsel %vm682_vm3, %v1475_v58, -1e+30  ;;  %v5068_v60 = vpop.f32.mrb[21].mxu1 }
 0x50b   :  { %v1511_v63 = vsel %vm1489_vm4, %v1488_v59, -inf }
 0x50c   :  { %1512 = vmax.xlane.f32.xlu1 %v1511_v63 }
 0x51d   :  { %854 = vrot.lane.b32.xlu1 %v5969_v28, %s5575_s22 }
 0x51e   :  { %852 = vrot.lane.b32.xlu0 %v5952_v26, %s5575_s22  ;;  %v1492_v0 = vpop.xlane.xlu0 %1491 }
 0x51f   :  { %v1514_v3 = vsub.f32 %v1481_v31, %v1492_v0 }
 0x521   :  { %858 = vrot.lane.b32.xlu1 %v5952_v26, %s5577_s23  ;;  %v1522_v4 = vmul.f32 1.442695, %v1514_v3 }
 0x523   :  { %5462 = vpow2.f32 %v1522_v4 }
 0x525   :  { %860 = vrot.lane.b32.xlu1 %v5969_v28, %s5577_s23 }
 0x528   :  { %v1495_v5 = vpop.xlane.xlu1 %1494 }
 0x529   :  { %v1515_v6 = vsub.f32 %v1482_v35, %v1495_v5 }
 0x52b   :  { %v1524_v7 = vmul.f32 1.442695, %v1515_v6 }
 0x52d   :  { %v5463_v8 = vpop.eup %5462  ;;  %5464 = vpow2.f32 %v1524_v7 }
 0x52e   :  { %v1538_v9 = vsel %vm1489_vm4, %v5463_v8, 0.0 }
 0x537   :  { %v5465_v10 = vpop.eup %5464 }
 0x538   :  { %v1541_v11 = vsel %vm1489_vm4, %v5465_v10, 0.0 }
 0x53d   :  { %1539 = vadd.xlane.f32.xlu0 %v1538_v9 }
 0x549   :  { %1542 = vadd.xlane.f32.xlu1 %v1541_v11 }
 0x589   :  { %v1498_v12 = vpop.xlane.xlu0 %1497 }
 0x58a   :  { %v1516_v13 = vsub.f32 %v1483_v39, %v1498_v12 }
 0x58c   :  { %v1526_v14 = vmul.f32 1.442695, %v1516_v13 }
 0x58d   :  { %v1501_v15 = vpop.xlane.xlu0 %1500 }
 0x58e   :  { %5466 = vpow2.f32 %v1526_v14  ;;  %v1517_v16 = vsub.f32 %v1484_v43, %v1501_v15 }
 0x590   :  { %v1528_v17 = vmul.f32 1.442695, %v1517_v16 }
 0x591   :  { %v1504_v18 = vpop.xlane.xlu0 %1503 }
 0x592   :  { %5468 = vpow2.f32 %v1528_v17  ;;  %v1518_v20 = vsub.f32 %v1485_v47, %v1504_v18 }
 0x594   :  { %v1530_v33 = vmul.f32 1.442695, %v1518_v20 }
 0x595   :  { %v1507_v23 = vpop.xlane.xlu1 %1506  ;;  %v1510_v24 = vpop.xlane.xlu0 %1509 }
 0x596   :  { %v1519_v25 = vsub.f32 %v1486_v54, %v1507_v23  ;;  %v1520_v27 = vsub.f32 %v1487_v51, %v1510_v24  ;;  %v5410_v23 = vld [vmem:[%s6528_s7] sm:$0xff]   ;;  %v5411_v24 = vld [vmem:[%s6528_s7 + $0x8] sm:$0xff]  }
 0x598   :  { %v5467_v30 = vpop.eup %5466  ;;  %v1532_v31 = vmul.f32 1.442695, %v1519_v25  ;;  %v1534_v32 = vmul.f32 1.442695, %v1520_v27 }
 0x599   :  { %v1513_v34 = vpop.xlane.xlu1 %1512  ;;  %v1544_v35 = vsel %vm1489_vm4, %v5467_v30, 0.0  ;;  %v853_v48 = vpop.permute.xlu0 %852 }
 0x59a   :  { %5470 = vpow2.f32 %v1532_v31  ;;  %v1521_v36 = vsub.f32 %v1488_v59, %v1513_v34  ;;  %1545 = vadd.xlane.f32.xlu0 %v1544_v35  ;;  %v5413_v35 = vld [vmem:[%s6528_s7 + $0x18] sm:$0xff]  }
 0x59b   :  { %5472 = vpow2.f32 %v1534_v32 }
 0x59c   :  { %v5469_v37 = vpop.eup %5468  ;;  %v1536_v38 = vmul.f32 1.442695, %v1521_v36  ;;  %5474 = vpow2.f32 %v1530_v33  ;;  %v5412_v33 = vld [vmem:[%s6528_s7 + $0x10] sm:$0xff]  }
 0x59d   :  { %v1547_v39 = vsel %vm1489_vm4, %v5469_v37, 0.0  ;;  %v855_v49 = vpop.permute.xlu1 %854 }
 0x59e   :  { %5476 = vpow2.f32 %v1536_v38  ;;  %1548 = vadd.xlane.f32.xlu1 %v1547_v39 }
 0x5a1   :  { %v859_v51 = vpop.permute.xlu1 %858 }
 0x5a4   :  { %v5471_v40 = vpop.eup %5470 }
 0x5a5   :  { %v6016_v41 = vpop.eup %5472  ;;  %v1553_v42 = vsel %vm1489_vm4, %v5471_v40, 0.0  ;;  %v861_v52 = vpop.permute.xlu1 %860 }
 0x5a6   :  { %1554 = vadd.xlane.f32.xlu1 %v1553_v42  ;;  %v1556_v43 = vsel %vm1489_vm4, %v6016_v41, 0.0  ;;  %v6021_v44 = vpop.eup %5474 }
 0x5a7   :  { %1557 = vadd.xlane.f32.xlu0 %v1556_v43  ;;  %v1550_v47 = vsel %vm1489_vm4, %v6021_v44, 0.0 }
 0x5a8   :  { %v5477_v45 = vpop.eup %5476 }
 0x5a9   :  { %v1559_v46 = vsel %vm1489_vm4, %v5477_v45, 0.0 }
 0x5aa   :  { %1560 = vadd.xlane.f32.xlu1 %v1559_v46 }
 0x5ab   :  { %1551 = vadd.xlane.f32.xlu0 %v1550_v47 }
 0x5bb   :  { %866 = vrot.lane.b32.xlu1 %v5969_v28, %s5576_s2 }
 0x5c1   :  { %864 = vrot.lane.b32.xlu0 %v5952_v26, %s5576_s2 }
 0x5ca   :  { %v1540_v50 = vpop.xlane.xlu0 %1539 }
 0x5cb   :  { %5478 = vrcp.f32 %v1540_v50 }
 0x5d5   :  { %v5479_v53 = vpop.eup %5478 }
 0x5d6   :  { %v1570_v54 = vmul.f32 %v5479_v53, %v5463_v8  ;;  %v1543_v55 = vpop.xlane.xlu1 %1542 }
 0x5d7   :  { %5480 = vrcp.f32 %v1543_v55 }
 0x5d8   :  { %5072 = vmatmul.mubr.msk.f32.vlgmr.msra.gmra.mrb[10].mxu0 %vm1489_vm4, %v1570_v54 }
 0x5d9   :  { %5080 = vmatpush3.msra.mxu0 %v853_v48  ;;  %5081 = vmatprep.mubr.msk.f32.mxu0 %vm5574_vm1, %v5573_v1 }
 0x5da   :  { %5089 = vmatprep.subr.mxu0 %v5573_v1 }
 0x5e1   :  { %v5481_v28 = vpop.eup %5480 }
 0x5e2   :  { %v1571_v26 = vmul.f32 %v5481_v28, %v5465_v10 }
 0x5e4   :  { %5077 = vmatmul.mubr.msk.f32.vlgmr.msra.gmra.mrb[22].mxu1 %vm1489_vm4, %v1571_v26 }
 0x5e5   :  { %5085 = vmatpush3.msra.mxu1 %v855_v49  ;;  %5086 = vmatprep.mubr.msk.f32.mxu1 %vm5574_vm1, %v5573_v1 }
 0x5e6   :  { %5094 = vmatprep.subr.mxu1 %v5573_v1 }
 0x627   :  { %v1546_v56 = vpop.xlane.xlu0 %1545 }
 0x628   :  { %5482 = vrcp.f32 %v1546_v56 }
 0x62b   :  { %v1549_v57 = vpop.xlane.xlu1 %1548 }
 0x62c   :  { %5484 = vrcp.f32 %v1549_v57 }
 0x632   :  { %v5483_v58 = vpop.eup %5482 }
 0x633   :  { %v1572_v59 = vmul.f32 %v5483_v58, %v5467_v30  ;;  %v1555_v60 = vpop.xlane.xlu1 %1554 }
 0x634   :  { %5486 = vrcp.f32 %v1555_v60  ;;  %v1558_v63 = vpop.xlane.xlu0 %1557  ;;  %v4719_v60 = vld [vmem:[%s6529_s8] ss:$0 sm:$0xff] }
 0x635   :  { %5082 = vmatmul.mubr.msk.f32.vlgmr.msra.gmra.mrb[12].mxu0 %vm1489_vm4, %v1572_v59 }
 0x636   :  { %v5485_v0 = vpop.eup %5484  ;;  %5090 = vmatpush3.msra.mxu0 %v859_v51  ;;  %5091 = vmatprep.mubr.msk.f32.mxu0 %vm5574_vm1, %v5573_v1 }
 0x637   :  { %v1573_v3 = vmul.f32 %v5485_v0, %v5469_v37  ;;  %v1561_v4 = vpop.xlane.xlu1 %1560  ;;  %5099 = vmatprep.subr.mxu0 %v5573_v1 }
 0x638   :  { %5488 = vrcp.f32 %v1561_v4  ;;  %v1552_v5 = vpop.xlane.xlu0 %1551 }
 0x639   :  { %5490 = vrcp.f32 %v1552_v5  ;;  %5087 = vmatmul.mubr.msk.f32.vlgmr.msra.gmra.mrb[24].mxu1 %vm1489_vm4, %v1573_v3 }
 0x63a   :  { %5095 = vmatpush3.msra.mxu1 %v861_v52  ;;  %5096 = vmatprep.mubr.msk.f32.mxu1 %vm5574_vm1, %v5573_v1  ;;  %5492 = vrcp.f32 %v1558_v63 }
 0x63b   :  { %5104 = vmatprep.subr.mxu1 %v5573_v1  ;;  %v867_v8 = vpop.permute.xlu1 %866 }
 0x63c   :  { %v865_v14 = vpop.permute.xlu0 %864 }
 0x63e   :  { %v5487_v6 = vpop.eup %5486 }
 0x63f   :  { %v1575_v7 = vmul.f32 %v5487_v6, %v5471_v40 }
 0x641   :  { %5097 = vmatmul.mubr.msk.f32.vlgmr.msra.gmra.mrb[26].mxu1 %vm1489_vm4, %v1575_v7 }
 0x642   :  { %v5489_v9 = vpop.eup %5488  ;;  %5105 = vmatpush3.msra.mxu1 %v867_v8  ;;  %5106 = vmatprep.mubr.msk.f32.mxu1 %vm5574_vm1, %v5573_v1 }
 0x643   :  { %v5491_v10 = vpop.eup %5490  ;;  %v1577_v11 = vmul.f32 %v5489_v9, %v5477_v45  ;;  %5121 = vmatprep.subr.bf16.mxu1 %v5573_v1 }
 0x644   :  { %v1574_v12 = vmul.f32 %v5491_v10, %v6021_v44  ;;  %v5493_v13 = vpop.eup %5492 }
 0x645   :  { %5107 = vmatmul.mubr.msk.f32.vlgmr.msra.gmra.mrb[28].mxu1 %vm1489_vm4, %v1577_v11  ;;  %v1576_v15 = vmul.f32 %v5493_v13, %v6016_v41 }
 0x646   :  { %5092 = vmatmul.mubr.msk.f32.vlgmr.msra.gmra.mrb[14].mxu0 %vm1489_vm4, %v1574_v12  ;;  %5129 = vmatprep.mubr.msk.bf16.mxu1 %vm5574_vm1, %v5573_v1 }
 0x647   :  { %5100 = vmatpush3.msra.mxu0 %v865_v14  ;;  %5101 = vmatprep.mubr.msk.f32.mxu0 %vm5574_vm1, %v5573_v1 }
 0x648   :  { %5109 = vmatprep.subr.bf16.mxu0 %v5573_v1 }
 0x64a   :  { %5102 = vmatmul.mubr.msk.f32.vlgmr.msra.gmra.mrb[16].mxu0 %vm1489_vm4, %v1576_v15 }
 0x64b   :  { %5117 = vmatprep.mubr.msk.bf16.mxu0 %vm5574_vm1, %v5573_v1  ;;  %5110 = vmatpush3.bf16.msra.mxu0 %v5410_v23  ;;  %v5416_v23 = vld [vmem:[%s6532_s11 + $0x10] sm:$0xff]  }
 0x64c   :  { %5111 = vmatprep.subr.bf16.mxu0 %v5573_v1 }
 0x64f   :  { %5112 = vmatpush3.bf16.msra.mxu0 %v5411_v24  ;;  %v5417_v24 = vld [vmem:[%s6532_s11 + $0x18] sm:$0xff]  }
 0x650   :  { %5113 = vmatprep.subr.bf16.mxu0 %v5573_v1 }
 0x653   :  { %5114 = vmatpush3.bf16.msra.mxu0 %v5412_v33 }
 0x654   :  { %5115 = vmatprep.subr.bf16.mxu0 %v5573_v1 }
 0x657   :  { %5116 = vmatpush3.bf16.msra.mxu0 %v5413_v35 }
 0x658   :  { %5133 = vmatprep.subr.bf16.mxu0 %v5573_v1 }
 0x6ab   :  { %v1647_v16 = vpop.f32.mrb[10].mxu0 }
 0x6ac   :  { %v5073_v17 = vpop.f32.mrb[11].mxu0 }
 0x6b7   :  { %v1720_v18 = vpop.f32.mrb[22].mxu1 }
 0x6b8   :  { %v5078_v20 = vpop.f32.mrb[23].mxu1 }
 0x6b9   :  { %v5415_v20 = vld [vmem:[%s6532_s11 + $0x8] sm:$0xff]  }
 0x708   :  { %v1793_v25 = vpop.f32.mrb[12].mxu0 }
 0x709   :  { %v5083_v27 = vpop.f32.mrb[13].mxu0 }
 0x70c   :  { %v1866_v30 = vpop.f32.mrb[24].mxu1 }
 0x70d   :  { %v5311_v31 = vpack.i.bf16 %v1866_v30, %v1793_v25  ;;  %v5088_v32 = vpop.f32.mrb[25].mxu1 }
 0x70f   :  { %5312 = vrot.lane.b32.xlu0 %v5311_v31, %s6546_s28 }
 0x714   :  { %v2012_v34 = vpop.f32.mrb[26].mxu1 }
 0x715   :  { %v5098_v36 = vpop.f32.mrb[27].mxu1 }
 0x716   :  { %v4720_v36 = vld [vmem:[%s6530_s9] ss:$0 sm:$0xff] }
 0x718   :  { %v2158_v37 = vpop.f32.mrb[28].mxu1 }
 0x719   :  { %v1939_v38 = vpop.f32.mrb[14].mxu0  ;;  %v5108_v39 = vpop.f32.mrb[29].mxu1 }
 0x71a   :  { %v5316_v40 = vpack.i.bf16 %v2012_v34, %v1939_v38  ;;  %v5093_v41 = vpop.f32.mrb[15].mxu0 }
 0x71c   :  { %5317 = vrot.lane.b32.xlu1 %v5316_v40, %s6545_s1  ;;  %v4721_v40 = vld [vmem:[%s6531_s10] ss:$0 sm:$0xff] }
 0x71d   :  { %v2085_v42 = vpop.f32.mrb[16].mxu0 }
 0x71e   :  { %v5321_v43 = vpack.i.bf16 %v2158_v37, %v2085_v42  ;;  %v5103_v44 = vpop.f32.mrb[17].mxu0 }
 0x720   :  { %5322 = vrot.lane.b32.xlu0 %v5321_v43, %s6544_s20  ;;  %s6555_s20 = smov 16  }
 0x781   :  { %v5313_v45 = vpop.permute.xlu0 %5312 }
 0x782   :  { %v5315_v47 = vunpack.i.h.bf16 %v5313_v45  ;;  %v5314_v48 = vunpack.i.l.bf16 %v5313_v45  ;;  %v5418_v45 = vld [vmem:[%s6534_s13] sm:$0xff]  }
 0x784   :  { %v2187_v52 = vsel %vm872_vm2, %v1720_v18, %v5315_v47  ;;  %v2186_v53 = vsel %vm872_vm2, %v1647_v16, %v5314_v48  ;;  %v5414_v18 = vld [vmem:[%s6532_s11] sm:$0xff]   ;;  %v5420_v47 = vld [vmem:[%s6534_s13 + $0x10] sm:$0xff]  }
 0x785   :  { %5122 = vmatpush3.bf16.msra.mxu1 %v5414_v18  ;;  %v5422_v48 = vld [vmem:[%s6534_s13 + $0x20] sm:$0xff]  }
 0x786   :  { %5123 = vmatprep.subr.bf16.mxu1 %v5573_v1 }
 0x789   :  { %5124 = vmatpush3.bf16.msra.mxu1 %v5415_v20 }
 0x78a   :  { %5125 = vmatprep.subr.bf16.mxu1 %v5573_v1 }
 0x78d   :  { %5126 = vmatpush3.bf16.msra.mxu1 %v5416_v23 }
 0x78e   :  { %v5318_v46 = vpop.permute.xlu1 %5317  ;;  %5127 = vmatprep.subr.bf16.mxu1 %v5573_v1 }
 0x78f   :  { %v5320_v49 = vunpack.i.h.bf16 %v5318_v46  ;;  %v5319_v50 = vunpack.i.l.bf16 %v5318_v46  ;;  %v5419_v46 = vld [vmem:[%s6534_s13 + $0x8] sm:$0xff]  }
 0x791   :  { %v2189_v28 = vsel %vm2188_vm5, %v2186_v53, %v5319_v50  ;;  %v2190_v26 = vsel %vm2188_vm5, %v2187_v52, %v5320_v49  ;;  %5128 = vmatpush3.bf16.msra.mxu1 %v5417_v24  ;;  %v5423_v49 = vld [vmem:[%s6534_s13 + $0x28] sm:$0xff]   ;;  %v5424_v50 = vld [vmem:[%s6534_s13 + $0x30] sm:$0xff]   ;;  %v4722_v52 = vld [vmem:[%s6533_s12] ss:$0 sm:$0xff] }
 0x792   :  { %v5323_v51 = vpop.permute.xlu0 %5322 }
 0x793   :  { %v5325_v54 = vunpack.i.h.bf16 %v5323_v51  ;;  %v5324_v55 = vunpack.i.l.bf16 %v5323_v51  ;;  %v5425_v51 = vld [vmem:[%s6534_s13 + $0x38] sm:$0xff]  }
 0x795   :  { %v2192_v56 = vsel %vm2191_vm6, %v2189_v28, %v5324_v55  ;;  %v2193_v57 = vsel %vm2191_vm6, %v2190_v26, %v5325_v54 }
 0x796   :  { %v2194_v58 = vpack.c.bf16 %v2193_v57, %v2192_v56 }
 0x798   :  { %5118 = vmatmul.mubr.msk.bf16.vlgmr.msra.gmra.mrb[20].mxu0 %vm685_vm0, %v2194_v58 }
 0x799   :  { %5149 = vmatprep.mubr.msk.bf16.mxu0 %vm5574_vm1, %v5573_v1  ;;  %5134 = vmatpush3.bf16.msra.mxu0 %v5418_v45  ;;  %v5434_v45 = vld [vmem:[%s6526_s5 + $0x64] ss:$8 sps:$4 sm:$0xff]  }
 0x79a   :  { %5135 = vmatprep.subr.bf16.mxu0 %v5573_v1 }
 0x79d   :  { %5136 = vmatpush3.bf16.msra.mxu0 %v5419_v46  ;;  %v5432_v46 = vld [vmem:[%s6526_s5 + $0x60] ss:$8 sps:$4 sm:$0xff]  }
 0x79e   :  { %5137 = vmatprep.subr.bf16.mxu0 %v5573_v1 }
 0x7a1   :  { %5138 = vmatpush3.bf16.msra.mxu0 %v5420_v47  ;;  %v5435_v47 = vld [vmem:[%s6526_s5 + $0x70] ss:$8 sps:$4 sm:$0xff]  }
 0x7a2   :  { %5139 = vmatprep.subr.bf16.mxu0 %v5573_v1 }
 0x86b   :  { %v2264_v59 = vpop.f32.mrb[20].mxu0 }
 0x86c   :  { %v2271_v63 = vadd.f32 %v2264_v59, %v5850_v21  ;;  %v5119_v0 = vpop.f32.mrb[21].mxu0 }
 0x86d   :  { %v2267_v3 = vpop.f32.mrb[22].mxu0 }
 0x86e   :  { %v6094_v4 = vadd.f32 %v4719_v60, %v2271_v63  ;;  %v2272_v5 = vadd.f32 %v2267_v3, %v5852_v22  ;;  %v5120_v6 = vpop.f32.mrb[23].mxu0 }
 0x870   :  { %v6097_v7 = vadd.f32 %v4719_v60, %v2272_v5  ;;  %v2284_v8 = vsel %vm685_vm0, %v6094_v4, 0.0 }
 0x871   :  { %2285 = vadd.xlane.f32.xlu1 %v2284_v8 }
 0x872   :  { %v2287_v9 = vsel %vm685_vm0, %v6097_v7, 0.0 }
 0x873   :  { %2288 = vadd.xlane.f32.xlu0 %v2287_v9 }
 0x8fe   :  { %v2286_v10 = vpop.xlane.xlu1 %2285 }
 0x8ff   :  { %v2290_v11 = vmul.f32 0.015625, %v2286_v10 }
 0x900   :  { %v2289_v21 = vpop.xlane.xlu0 %2288 }
 0x901   :  { %v2292_v12 = vsub.f32 %v6094_v4, %v2290_v11  ;;  %v2291_v13 = vmul.f32 0.015625, %v2289_v21 }
 0x903   :  { %v2293_v14 = vsub.f32 %v6097_v7, %v2291_v13  ;;  %v2294_v22 = vmul.f32 %v2292_v12, %v2292_v12 }
 0x905   :  { %v2296_v15 = vsel %vm685_vm0, %v2294_v22, 0.0  ;;  %v2295_v16 = vmul.f32 %v2293_v14, %v2293_v14 }
 0x906   :  { %2297 = vadd.xlane.f32.xlu0 %v2296_v15 }
 0x907   :  { %v2299_v17 = vsel %vm685_vm0, %v2295_v16, 0.0 }
 0x90a   :  { %2300 = vadd.xlane.f32.xlu0 %v2299_v17  ;;  %v4736_v17 = vld [vmem:[%s6535_s14] ss:$0 sm:$0xff] }
 0x993   :  { %v2298_v25 = vpop.xlane.xlu0 %2297 }
 0x994   :  { %v2302_v27 = vmul.f32 0.015625, %v2298_v25 }
 0x996   :  { %v2304_v30 = vadd.f32 1e-06, %v2302_v27 }
 0x997   :  { %v2301_v31 = vpop.xlane.xlu0 %2300 }
 0x998   :  { %5494 = vrsqrt.f32 %v2304_v30  ;;  %v2303_v32 = vmul.f32 0.015625, %v2301_v31 }
 0x99a   :  { %v2305_v33 = vadd.f32 1e-06, %v2303_v32 }
 0x99c   :  { %5496 = vrsqrt.f32 %v2305_v33 }
 0x9a2   :  { %v5495_v34 = vpop.eup %5494 }
 0x9a3   :  { %v2308_v35 = vmul.f32 %v5495_v34, %v2292_v12 }
 0x9a5   :  { %v2316_v38 = vmul.f32 %v4720_v36, %v2308_v35 }
 0x9a6   :  { %v5497_v37 = vpop.eup %5496 }
 0x9a7   :  { %v2309_v39 = vmul.f32 %v5497_v37, %v2293_v14  ;;  %v2324_v42 = vadd.f32 %v4721_v40, %v2316_v38 }
 0x9a9   :  { %v2317_v41 = vmul.f32 %v4720_v36, %v2309_v39 }
 0x9ab   :  { %v2325_v43 = vadd.f32 %v4721_v40, %v2317_v41  ;;  %v5428_v41 = vld [vmem:[%s6526_s5 + $0x44] ss:$8 sps:$4 sm:$0xff]  }
 0x9ac   :  { %2657 = vmatprep.subr.bf16.mxu1 %v5428_v41 }
 0x9ad   :  { %v2326_v44 = vpack.c.bf16 %v2325_v43, %v2324_v42  ;;  %v5426_v42 = vld [vmem:[%s6526_s5 + $0x40] ss:$8 sps:$4 sm:$0xff]   ;;  %v5431_v43 = vld [vmem:[%s6526_s5 + $0x54] ss:$8 sps:$4 sm:$0xff]  }
 0x9af   :  { %5130 = vmatmul.mubr.msk.bf16.vlgmr.msra.gmra.mrb[32].mxu1 %vm685_vm0, %v2326_v44  ;;  %v5429_v44 = vld [vmem:[%s6526_s5 + $0x50] ss:$8 sps:$4 sm:$0xff]  }
 0x9b0   :  { %2689 = vmatprep.mubr.bf16.mxu1 %v5572_v2  ;;  %v5421_v2 = vld [vmem:[%s6534_s13 + $0x18] sm:$0xff]   ;;  %2658 = vmatpush1.bf16.msra.mxu1 %v5426_v42 }
 0x9b1   :  { %5140 = vmatpush3.bf16.msra.mxu0 %v5421_v2  ;;  %2659 = vmatprep.subr.bf16.mxu1 %v5431_v43  ;;  %v5437_v2 = vld [vmem:[%s6526_s5 + $0x74] ss:$8 sps:$4 sm:$0xff]  }
 0x9b2   :  { %5141 = vmatprep.subr.bf16.mxu0 %v5573_v1 }
 0x9b4   :  { %2660 = vmatpush1.bf16.msra.mxu1 %v5429_v44 }
 0x9b5   :  { %5142 = vmatpush3.bf16.msra.mxu0 %v5422_v48  ;;  %2661 = vmatprep.subr.bf16.mxu1 %v5434_v45 }
 0x9b6   :  { %5143 = vmatprep.subr.bf16.mxu0 %v5573_v1 }
 0x9b8   :  { %2662 = vmatpush1.bf16.msra.mxu1 %v5432_v46 }
 0x9b9   :  { %5144 = vmatpush3.bf16.msra.mxu0 %v5423_v49  ;;  %2663 = vmatprep.subr.bf16.mxu1 %v5437_v2 }
 0x9ba   :  { %5145 = vmatprep.subr.bf16.mxu0 %v5573_v1 }
 0x9bc   :  { %2664 = vmatpush1.bf16.msra.mxu1 %v5435_v47 }
 0x9bd   :  { %5146 = vmatpush3.bf16.msra.mxu0 %v5424_v50  ;;  %5153 = vmatprep.subr.mxu1 %v5573_v1 }
 0x9be   :  { %5147 = vmatprep.subr.bf16.mxu0 %v5573_v1 }
 0x9c1   :  { %5148 = vmatpush3.bf16.msra.mxu0 %v5425_v51 }
 0x9c2   :  { %5173 = vmatprep.subr.mxu0 %v5573_v1 }
 0xa82   :  { %v2403_v53 = vpop.f32.mrb[32].mxu1 }
 0xa83   :  { %v2404_v54 = vadd.f32 %v4722_v52, %v2403_v53  ;;  %v5131_v55 = vpop.f32.mrb[33].mxu1 }
 0xa84   :  { %v2406_v28 = vpop.f32.mrb[34].mxu1  ;;  %v4739_v55 = vld [vmem:[%s6554_s0 + $0x1] ss:$0 sm:$0xff] }
 0xa85   :  { %v2412_v26 = vmul.f32 0.044715, %v2404_v54  ;;  %v2407_v56 = vadd.f32 %v4722_v52, %v2406_v28  ;;  %v5132_v57 = vpop.f32.mrb[35].mxu1  ;;  %v2410_v21 = vmul.f32 0.5, %v2404_v54 }
 0xa87   :  { %v2414_v58 = vmul.f32 %v2412_v26, %v2404_v54  ;;  %v2413_v59 = vmul.f32 0.044715, %v2407_v56  ;;  %v2411_v12 = vmul.f32 0.5, %v2407_v56 }
 0xa89   :  { %v2416_v60 = vmul.f32 %v2414_v58, %v2404_v54  ;;  %v2415_v63 = vmul.f32 %v2413_v59, %v2407_v56  ;;  %v4740_v58 = vld [vmem:[%s6525_s4 + $0x1] ss:$0 sm:$0xff] }
 0xa8b   :  { %v2418_v0 = vadd.f32 %v2416_v60, %v2404_v54  ;;  %v2417_v3 = vmul.f32 %v2415_v63, %v2407_v56 }
 0xa8d   :  { %v2420_v5 = vmul.f32 0.7978846, %v2418_v0  ;;  %v2419_v6 = vadd.f32 %v2417_v3, %v2407_v56  ;;  %v4749_v3 = vld [vmem:[%s6527_s6 + $0x2] sm:$0x3] }
 0xa8f   :  { %5498 = vtanh.f32 %v2420_v5  ;;  %v2421_v8 = vmul.f32 0.7978846, %v2419_v6  ;;  %v2607_v5 = vrot.slane %v4749_v3, %v742_v62 }
 0xa91   :  { %5500 = vtanh.f32 %v2421_v8 }
 0xa99   :  { %v5499_v9 = vpop.eup %5498 }
 0xa9a   :  { %v2424_v10 = vadd.f32 1.0, %v5499_v9 }
 0xa9b   :  { %v5501_v11 = vpop.eup %5500 }
 0xa9c   :  { %v2425_v13 = vadd.f32 1.0, %v5501_v11  ;;  %v2426_v14 = vmul.f32 %v2424_v10, %v2410_v21 }
 0xa9e   :  { %v2427_v22 = vmul.f32 %v2425_v13, %v2411_v12 }
 0xaa0   :  { %v2428_v15 = vpack.c.bf16 %v2427_v22, %v2426_v14 }
 0xaa2   :  { %5150 = vmatmul.mubr.bf16.vlgmr.msra.gmra.mrb[24].mxu0 %v2428_v15 }
 0xaa3   :  { %5175 = vmatprep.mubr.msk.f32.mxu0 %vm5574_vm1, %v5573_v1 }
 0xb75   :  { %v2527_v16 = vpop.f32.mrb[24].mxu0 }
 0xb76   :  { %v2534_v18 = vadd.f32 %v2527_v16, %v6094_v4  ;;  %v5151_v20 = vpop.f32.mrb[25].mxu0 }
 0xb77   :  { %v2530_v23 = vpop.f32.mrb[26].mxu0 }
 0xb78   :  { %v6171_v24 = vadd.f32 %v4736_v17, %v2534_v18  ;;  %v2535_v25 = vadd.f32 %v2530_v23, %v6097_v7  ;;  %v5152_v27 = vpop.f32.mrb[27].mxu0 }
 0xb79   :  { %v2611_v27 = vrot.slane %v4749_v3, %v746_v19 }
 0xb7a   :  { %v6174_v30 = vadd.f32 %v4736_v17, %v2535_v25  ;;  %v2549_v31 = vsel %vm685_vm0, %v6171_v24, 0.0 }
 0xb7b   :  { %2550 = vadd.xlane.f32.xlu1 %v2549_v31 }
 0xb7c   :  { %v2552_v32 = vsel %vm685_vm0, %v6174_v30, 0.0 }
 0xb7d   :  { %2553 = vadd.xlane.f32.xlu0 %v2552_v32 }
 0xc08   :  { %v2551_v33 = vpop.xlane.xlu1 %2550 }
 0xc09   :  { %v2555_v34 = vmul.f32 0.015625, %v2551_v33 }
 0xc0a   :  { %v2554_v4 = vpop.xlane.xlu0 %2553 }
 0xc0b   :  { %v2557_v35 = vsub.f32 %v6171_v24, %v2555_v34  ;;  %v2556_v36 = vmul.f32 0.015625, %v2554_v4 }
 0xc0d   :  { %v2558_v37 = vsub.f32 %v6174_v30, %v2556_v36  ;;  %v2559_v7 = vmul.f32 %v2557_v35, %v2557_v35 }
 0xc0f   :  { %v2561_v38 = vsel %vm685_vm0, %v2559_v7, 0.0  ;;  %v2560_v39 = vmul.f32 %v2558_v37, %v2558_v37 }
 0xc10   :  { %2562 = vadd.xlane.f32.xlu1 %v2561_v38 }
 0xc11   :  { %v2564_v40 = vsel %vm685_vm0, %v2560_v39, 0.0 }
 0xc12   :  { %2565 = vadd.xlane.f32.xlu0 %v2564_v40 }
 0xc9d   :  { %v2563_v48 = vpop.xlane.xlu1 %2562 }
 0xc9e   :  { %v2567_v49 = vmul.f32 0.015625, %v2563_v48 }
 0xc9f   :  { %v2566_v50 = vpop.xlane.xlu0 %2565 }
 0xca0   :  { %v2569_v51 = vadd.f32 1e-06, %v2567_v49  ;;  %v2568_v52 = vmul.f32 0.015625, %v2566_v50 }
 0xca2   :  { %5502 = vrsqrt.f32 %v2569_v51  ;;  %v2570_v53 = vadd.f32 1e-06, %v2568_v52 }
 0xca4   :  { %5504 = vrsqrt.f32 %v2570_v53 }
 0xcac   :  { %v5503_v54 = vpop.eup %5502 }
 0xcad   :  { %v2573_v28 = vmul.f32 %v5503_v54, %v2557_v35 }
 0xcae   :  { %v5505_v26 = vpop.eup %5504 }
 0xcaf   :  { %v2581_v56 = vmul.f32 %v4739_v55, %v2573_v28  ;;  %v2574_v57 = vmul.f32 %v5505_v26, %v2558_v37 }
 0xcb1   :  { %v2582_v59 = vmul.f32 %v4739_v55, %v2574_v57  ;;  %v2589_v60 = vadd.f32 %v4740_v58, %v2581_v56 }
 0xcb3   :  { %v2590_v63 = vadd.f32 %v4740_v58, %v2582_v59 }
 0xcb5   :  { %v2591_v0 = vpack.c.bf16 %v2590_v63, %v2589_v60 }
 0xcb7   :  { %4758 = vmatmul.mubr.msk.bf16.vlgmr.msra.gmra.mrb[36].mxu1 %vm685_vm0, %v2591_v0 }
 0xcb8   :  { %5155 = vmatprep.mubr.msk.f32.mxu1 %vm5574_vm1, %v5573_v1 }
 0xd8a   :  { %v2691_v6 = vpop.f32.mrb[36].mxu1 }
 0xd8b   :  { %v2692_v8 = vadd.f32 %v2691_v6, %v2607_v5  ;;  %v2693_v9 = vpop.f32.mrb[37].mxu1 }
 0xd8c   :  { %v2695_v10 = vpop.f32.mrb[38].mxu1  ;;  %v6272_v33 = vadd.f32 %v2693_v9, %v2611_v27 }
 0xd8d   :  { %v2696_v11 = vadd.f32 %v2695_v10, %v2607_v5  ;;  %v2697_v21 = vpop.f32.mrb[39].mxu1  ;;  %2702 = vrot.lane.b32.xlu1 %v2692_v8, %s5575_s22 }
 0xd8e   :  { %v6274_v34 = vadd.f32 %v2697_v21, %v2611_v27 }
 0xd8f   :  { %2704 = vrot.lane.b32.xlu0 %v2696_v11, %s5575_s22 }
 0xd91   :  { %2706 = vrot.lane.b32.xlu1 %v2692_v8, %s5577_s23 }
 0xd93   :  { %2712 = vrot.lane.b32.xlu0 %v2696_v11, %s5576_s2 }
 0xd95   :  { %2708 = vrot.lane.b32.xlu1 %v2696_v11, %s5577_s23 }
 0xd97   :  { %2810 = vrot.lane.b32.xlu0 %v2696_v11, %s5578_s24 }
 0xd99   :  { %2710 = vrot.lane.b32.xlu1 %v2692_v8, %s5576_s2 }
 0xd9d   :  { %2734 = vrot.lane.b32.xlu1 %v2692_v8, %s5578_s24 }
 0xdff   :  { %v2703_v62 = vpop.permute.xlu1 %2702 }
 0xe00   :  { %2886 = vrot.lane.b32.xlu1 %v2703_v62, %s5578_s24 }
 0xe01   :  { %v2705_v12 = vpop.permute.xlu0 %2704 }
 0xe02   :  { %2962 = vrot.lane.b32.xlu0 %v2705_v12, %s5578_s24 }
 0xe03   :  { %v2707_v13 = vpop.permute.xlu1 %2706 }
 0xe04   :  { %3038 = vrot.lane.b32.xlu1 %v2707_v13, %s5578_s24 }
 0xe05   :  { %v2713_v22 = vpop.permute.xlu0 %2712 }
 0xe07   :  { %v2709_v14 = vpop.permute.xlu1 %2708 }
 0xe08   :  { %3114 = vrot.lane.b32.xlu0 %v2709_v14, %s5578_s24 }
 0xe09   :  { %v2811_v17 = vpop.permute.xlu0 %2810 }
 0xe0b   :  { %v2711_v15 = vpop.permute.xlu1 %2710 }
 0xe0c   :  { %3266 = vrot.lane.b32.xlu0 %v2713_v22, %s5578_s24  ;;  %3190 = vrot.lane.b32.xlu1 %v2711_v15, %s5578_s24 }
 0xe0f   :  { %v2735_v16 = vpop.permute.xlu1 %2734 }
 0xe10   :  { %5154 = vmatpush3.xpose.msk.msra.mxu1 %vm872_vm2, %v2735_v16 }
 0xe11   :  { %5158 = vmatprep.subr.mxu1 %v5573_v1 }
 0xe13   :  { %5156 = vmatmul.mubr.msk.f32.vlgmr.msra.gmra.mrb[30].mxu1 %vm872_vm2, %v2692_v8 }
 0xe14   :  { %5159 = vmatpush3.xpose.msk.msra.mxu1 %vm872_vm2, %v2811_v17  ;;  %5160 = vmatprep.mubr.msk.f32.mxu1 %vm5574_vm1, %v5573_v1 }
 0xe15   :  { %5163 = vmatprep.subr.mxu1 %v5573_v1 }
 0xe17   :  { %5161 = vmatmul.mubr.msk.f32.vlgmr.msra.gmra.mrb[40].mxu1 %vm872_vm2, %v2696_v11 }
 0xe18   :  { %5165 = vmatprep.mubr.msk.f32.mxu1 %vm5574_vm1, %v5573_v1 }
 0xe72   :  { %v2887_v18 = vpop.permute.xlu1 %2886 }
 0xe73   :  { %5164 = vmatpush3.xpose.msk.msra.mxu1 %vm872_vm2, %v2887_v18 }
 0xe74   :  { %5168 = vmatprep.subr.mxu1 %v5573_v1  ;;  %v2963_v20 = vpop.permute.xlu0 %2962 }
 0xe76   :  { %5166 = vmatmul.mubr.msk.f32.vlgmr.msra.gmra.mrb[42].mxu1 %vm872_vm2, %v2703_v62  ;;  %v3039_v23 = vpop.permute.xlu1 %3038 }
 0xe77   :  { %5169 = vmatpush3.xpose.msk.msra.mxu1 %vm872_vm2, %v2963_v20  ;;  %5174 = vmatpush3.xpose.msk.msra.mxu0 %vm872_vm2, %v3039_v23 }
 0xe78   :  { %5170 = vmatprep.mubr.msk.f32.mxu1 %vm5574_vm1, %v5573_v1  ;;  %5178 = vmatprep.subr.mxu1 %v5573_v1 }
 0xe79   :  { %5183 = vmatprep.subr.mxu0 %v5573_v1 }
 0xe7a   :  { %v3115_v25 = vpop.permute.xlu0 %3114  ;;  %5171 = vmatmul.mubr.msk.f32.vlgmr.msra.gmra.mrb[44].mxu1 %vm872_vm2, %v2705_v12  ;;  %5176 = vmatmul.mubr.msk.f32.vlgmr.msra.gmra.mrb[18].mxu0 %vm872_vm2, %v2707_v13 }
 0xe7b   :  { %5179 = vmatpush3.xpose.msk.msra.mxu1 %vm872_vm2, %v3115_v25  ;;  %5180 = vmatprep.mubr.msk.f32.mxu1 %vm5574_vm1, %v5573_v1 }
 0xe7c   :  { %5188 = vmatprep.subr.mxu1 %v5573_v1  ;;  %5185 = vmatprep.mubr.msk.f32.mxu0 %vm5574_vm1, %v5573_v1 }
 0xe7e   :  { %v3267_v31 = vpop.permute.xlu0 %3266  ;;  %5181 = vmatmul.mubr.msk.f32.vlgmr.msra.gmra.mrb[46].mxu1 %vm872_vm2, %v2709_v14  ;;  %v3191_v32 = vpop.permute.xlu1 %3190 }
 0xe7f   :  { %5184 = vmatpush3.xpose.msk.msra.mxu0 %vm872_vm2, %v3191_v32  ;;  %5189 = vmatpush3.xpose.msk.msra.mxu1 %vm872_vm2, %v3267_v31 }
 0xe80   :  { %5190 = vmatprep.mubr.msk.f32.mxu1 %vm5574_vm1, %v5573_v1  ;;  %5193 = vmatprep.subr.mxu0 %v5573_v1 }
 0xe81   :  { %5198 = vmatprep.subr.mxu1 %v5573_v1 }
 0xe82   :  { %5186 = vmatmul.mubr.msk.f32.vlgmr.msra.gmra.mrb[28].mxu0 %vm872_vm2, %v2711_v15  ;;  %5191 = vmatmul.mubr.msk.f32.vlgmr.msra.gmra.mrb[48].mxu1 %vm872_vm2, %v2713_v22 }
 0xe83   :  { %5194 = vmatpush3.msra.mxu0 %v6272_v33  ;;  %5199 = vmatpush3.msra.mxu1 %v6274_v34 }
 0xe84   :  { %5200 = vmatprep.mubr.msk.f32.mxu1 %vm5574_vm1, %v5573_v1  ;;  %5208 = vmatprep.subr.mxu1 %v5573_v1 }
 0xe85   :  { %5195 = vmatprep.mubr.msk.f32.mxu0 %vm5574_vm1, %v5573_v1  ;;  %5203 = vmatprep.subr.mxu0 %v5573_v1 }
 0xee6   :  { %v2806_v19 = vpop.f32.mrb[30].mxu1 }
 0xee7   :  { %v3342_v4 = vsel %vm682_vm3, %v2806_v19, -1e+30  ;;  %v5157_v35 = vpop.f32.mrb[31].mxu1 }
 0xee8   :  { %v3350_v36 = vsel %vm1489_vm4, %v3342_v4, -inf }
 0xee9   :  { %3351 = vmax.xlane.f32.xlu1 %v3350_v36 }
 0xeea   :  { %v2882_v37 = vpop.f32.mrb[40].mxu1 }
 0xeeb   :  { %v3343_v7 = vsel %vm682_vm3, %v2882_v37, -1e+30  ;;  %v5162_v38 = vpop.f32.mrb[41].mxu1 }
 0xeec   :  { %v3353_v39 = vsel %vm1489_vm4, %v3343_v7, -inf }
 0xeed   :  { %3354 = vmax.xlane.f32.xlu0 %v3353_v39 }
 0xf49   :  { %v2958_v40 = vpop.f32.mrb[42].mxu1 }
 0xf4a   :  { %v3344_v41 = vsel %vm682_vm3, %v2958_v40, -1e+30  ;;  %v5167_v42 = vpop.f32.mrb[43].mxu1 }
 0xf4b   :  { %v3356_v43 = vsel %vm1489_vm4, %v3344_v41, -inf }
 0xf4c   :  { %3357 = vmax.xlane.f32.xlu0 %v3356_v43 }
 0xf4d   :  { %v3034_v44 = vpop.f32.mrb[44].mxu1  ;;  %v3110_v45 = vpop.f32.mrb[18].mxu0 }
 0xf4e   :  { %v3345_v46 = vsel %vm682_vm3, %v3034_v44, -1e+30  ;;  %v3346_v47 = vsel %vm682_vm3, %v3110_v45, -1e+30  ;;  %v5172_v2 = vpop.f32.mrb[45].mxu1  ;;  %v5177_v48 = vpop.f32.mrb[19].mxu0 }
 0xf4f   :  { %v3359_v49 = vsel %vm1489_vm4, %v3345_v46, -inf  ;;  %v3362_v50 = vsel %vm1489_vm4, %v3346_v47, -inf }
 0xf50   :  { %3360 = vmax.xlane.f32.xlu0 %v3359_v49  ;;  %3363 = vmax.xlane.f32.xlu1 %v3362_v50 }
 0xf51   :  { %v3186_v51 = vpop.f32.mrb[46].mxu1 }
 0xf52   :  { %v3347_v52 = vsel %vm682_vm3, %v3186_v51, -1e+30  ;;  %v5182_v53 = vpop.f32.mrb[47].mxu1 }
 0xf53   :  { %v3365_v54 = vsel %vm1489_vm4, %v3347_v52, -inf }
 0xf54   :  { %3366 = vmax.xlane.f32.xlu0 %v3365_v54 }
 0xf55   :  { %v3262_v55 = vpop.f32.mrb[28].mxu0  ;;  %v3338_v28 = vpop.f32.mrb[48].mxu1 }
 0xf56   :  { %v3348_v26 = vsel %vm682_vm3, %v3262_v55, -1e+30  ;;  %v3349_v56 = vsel %vm682_vm3, %v3338_v28, -1e+30  ;;  %v5187_v57 = vpop.f32.mrb[29].mxu0  ;;  %v5192_v58 = vpop.f32.mrb[49].mxu1 }
 0xf57   :  { %v3371_v59 = vsel %vm1489_vm4, %v3349_v56, -inf  ;;  %v3368_v60 = vsel %vm1489_vm4, %v3348_v26, -inf }
 0xf58   :  { %3372 = vmax.xlane.f32.xlu0 %v3371_v59  ;;  %3369 = vmax.xlane.f32.xlu1 %v3368_v60 }
 0xf69   :  { %2716 = vrot.lane.b32.xlu1 %v6272_v33, %s5575_s22 }
 0xf6d   :  { %2722 = vrot.lane.b32.xlu1 %v6272_v33, %s5577_s23 }
 0xf6e   :  { %2718 = vrot.lane.b32.xlu0 %v6274_v34, %s5575_s22 }
 0xf71   :  { %2724 = vrot.lane.b32.xlu1 %v6274_v34, %s5577_s23 }
 0xf76   :  { %v3352_v3 = vpop.xlane.xlu1 %3351 }
 0xf77   :  { %v3374_v6 = vsub.f32 %v3342_v4, %v3352_v3 }
 0xf79   :  { %v3382_v8 = vmul.f32 1.442695, %v3374_v6 }
 0xf7a   :  { %v3355_v63 = vpop.xlane.xlu0 %3354 }
 0xf7b   :  { %v3375_v0 = vsub.f32 %v3343_v7, %v3355_v63 }
 0xf7d   :  { %v3384_v5 = vmul.f32 1.442695, %v3375_v0 }
 0xf7f   :  { %5506 = vpow2.f32 %v3384_v5 }
 0xf80   :  { %5508 = vpow2.f32 %v3382_v8 }
 0xf89   :  { %v5507_v9 = vpop.eup %5506 }
 0xf8a   :  { %v3401_v10 = vsel %vm1489_vm4, %v5507_v9, 0.0  ;;  %v5509_v11 = vpop.eup %5508 }
 0xf8b   :  { %v3398_v21 = vsel %vm1489_vm4, %v5509_v11, 0.0 }
 0xf8d   :  { %3402 = vadd.xlane.f32.xlu0 %v3401_v10 }
 0xf95   :  { %3399 = vadd.xlane.f32.xlu1 %v3398_v21 }
 0xfd9   :  { %v3358_v62 = vpop.xlane.xlu0 %3357 }
 0xfda   :  { %v3376_v12 = vsub.f32 %v3344_v41, %v3358_v62 }
 0xfdc   :  { %v3386_v13 = vmul.f32 1.442695, %v3376_v12  ;;  %v5438_v12 = vld [vmem:[%s6528_s7 + $0x20] sm:$0xff]  }
 0xfdd   :  { %v3361_v14 = vpop.xlane.xlu0 %3360  ;;  %v3364_v22 = vpop.xlane.xlu1 %3363 }
 0xfde   :  { %5510 = vpow2.f32 %v3386_v13  ;;  %v3377_v15 = vsub.f32 %v3345_v46, %v3361_v14  ;;  %v3378_v16 = vsub.f32 %v3346_v47, %v3364_v22 }
 0xfe0   :  { %v3388_v17 = vmul.f32 1.442695, %v3377_v15  ;;  %v3390_v18 = vmul.f32 1.442695, %v3378_v16  ;;  %v5439_v16 = vld [vmem:[%s6528_s7 + $0x28] sm:$0xff]  }
 0xfe1   :  { %v3367_v20 = vpop.xlane.xlu0 %3366 }
 0xfe2   :  { %5512 = vpow2.f32 %v3388_v17  ;;  %v3379_v23 = vsub.f32 %v3347_v52, %v3367_v20 }
 0xfe3   :  { %5514 = vpow2.f32 %v3390_v18  ;;  %v5440_v18 = vld [vmem:[%s6528_s7 + $0x30] sm:$0xff]  }
 0xfe4   :  { %v3392_v25 = vmul.f32 1.442695, %v3379_v23 }
 0xfe5   :  { %v3373_v27 = vpop.xlane.xlu0 %3372  ;;  %v3370_v31 = vpop.xlane.xlu1 %3369 }
 0xfe6   :  { %5516 = vpow2.f32 %v3392_v25  ;;  %v3381_v32 = vsub.f32 %v3349_v56, %v3373_v27  ;;  %v3380_v19 = vsub.f32 %v3348_v26, %v3370_v31  ;;  %v5441_v25 = vld [vmem:[%s6528_s7 + $0x38] sm:$0xff]   ;;  %s6557_s7 = smov 48  }
 0xfe8   :  { %v5511_v4 = vpop.eup %5510  ;;  %v3396_v35 = vmul.f32 1.442695, %v3381_v32  ;;  %v3394_v36 = vmul.f32 1.442695, %v3380_v19 }
 0xfe9   :  { %v3404_v37 = vsel %vm1489_vm4, %v5511_v4, 0.0  ;;  %v2717_v47 = vpop.permute.xlu1 %2716  ;;  %v2719_v2 = vpop.permute.xlu0 %2718 }
 0xfea   :  { %5518 = vpow2.f32 %v3396_v35  ;;  %3405 = vadd.xlane.f32.xlu1 %v3404_v37 }
 0xfeb   :  { %5520 = vpow2.f32 %v3394_v36 }
 0xfec   :  { %v5513_v7 = vpop.eup %5512 }
 0xfed   :  { %v5515_v38 = vpop.eup %5514  ;;  %v3407_v39 = vsel %vm1489_vm4, %v5513_v7, 0.0  ;;  %v2723_v48 = vpop.permute.xlu1 %2722 }
 0xfee   :  { %3408 = vadd.xlane.f32.xlu0 %v3407_v39  ;;  %v3410_v40 = vsel %vm1489_vm4, %v5515_v38, 0.0 }
 0xfef   :  { %3411 = vadd.xlane.f32.xlu1 %v3410_v40 }
 0xff0   :  { %v5517_v41 = vpop.eup %5516 }
 0xff1   :  { %v3413_v42 = vsel %vm1489_vm4, %v5517_v41, 0.0  ;;  %v2725_v50 = vpop.permute.xlu1 %2724 }
 0xff2   :  { %3414 = vadd.xlane.f32.xlu0 %v3413_v42 }
 0xff4   :  { %v6325_v43 = vpop.eup %5518 }
 0xff5   :  { %v6327_v44 = vpop.eup %5520  ;;  %v3419_v45 = vsel %vm1489_vm4, %v6325_v43, 0.0 }
 0xff6   :  { %3420 = vadd.xlane.f32.xlu0 %v3419_v45  ;;  %v3416_v46 = vsel %vm1489_vm4, %v6327_v44, 0.0 }
 0xff7   :  { %3417 = vadd.xlane.f32.xlu1 %v3416_v46 }
0x1008   :  { %2728 = vrot.lane.b32.xlu1 %v6272_v33, %s5576_s2 }
0x100c   :  { %2730 = vrot.lane.b32.xlu0 %v6274_v34, %s5576_s2 }
0x101a   :  { %v3403_v49 = vpop.xlane.xlu0 %3402 }
0x101b   :  { %5522 = vrcp.f32 %v3403_v49 }
0x1022   :  { %v3400_v51 = vpop.xlane.xlu1 %3399 }
0x1023   :  { %5524 = vrcp.f32 %v3400_v51 }
0x1025   :  { %v5523_v52 = vpop.eup %5522 }
0x1026   :  { %v3431_v53 = vmul.f32 %v5523_v52, %v5507_v9 }
0x1028   :  { %5201 = vmatmul.mubr.msk.f32.vlgmr.msra.gmra.mrb[50].mxu1 %vm1489_vm4, %v3431_v53 }
0x1029   :  { %5209 = vmatpush3.msra.mxu1 %v2719_v2  ;;  %5210 = vmatprep.mubr.msk.f32.mxu1 %vm5574_vm1, %v5573_v1 }
0x102a   :  { %5218 = vmatprep.subr.mxu1 %v5573_v1 }
0x102d   :  { %v5525_v33 = vpop.eup %5524 }
0x102e   :  { %v3430_v34 = vmul.f32 %v5525_v33, %v5509_v11 }
0x1030   :  { %5196 = vmatmul.mubr.msk.f32.vlgmr.msra.gmra.mrb[30].mxu0 %vm1489_vm4, %v3430_v34 }
0x1031   :  { %5204 = vmatpush3.msra.mxu0 %v2717_v47  ;;  %5205 = vmatprep.mubr.msk.f32.mxu0 %vm5574_vm1, %v5573_v1 }
0x1032   :  { %5213 = vmatprep.subr.mxu0 %v5573_v1 }
0x1077   :  { %v3406_v54 = vpop.xlane.xlu1 %3405 }
0x1078   :  { %5526 = vrcp.f32 %v3406_v54 }
0x107b   :  { %v3409_v55 = vpop.xlane.xlu0 %3408 }
0x107c   :  { %5528 = vrcp.f32 %v3409_v55  ;;  %v3412_v28 = vpop.xlane.xlu1 %3411  ;;  %v4797_v55 = vld [vmem:[%s6529_s8 + $0x1] ss:$0 sm:$0xff] }
0x107d   :  { %5530 = vrcp.f32 %v3412_v28 }
0x107f   :  { %v3415_v26 = vpop.xlane.xlu0 %3414 }
0x1080   :  { %5532 = vrcp.f32 %v3415_v26 }
0x1082   :  { %v5527_v56 = vpop.eup %5526 }
0x1083   :  { %v3432_v57 = vmul.f32 %v5527_v56, %v5511_v4  ;;  %v3421_v58 = vpop.xlane.xlu0 %3420 }
0x1084   :  { %5534 = vrcp.f32 %v3421_v58  ;;  %v3418_v59 = vpop.xlane.xlu1 %3417 }
0x1085   :  { %5536 = vrcp.f32 %v3418_v59  ;;  %5206 = vmatmul.mubr.msk.f32.vlgmr.msra.gmra.mrb[32].mxu0 %vm1489_vm4, %v3432_v57 }
0x1086   :  { %v5529_v60 = vpop.eup %5528  ;;  %5214 = vmatpush3.msra.mxu0 %v2723_v48  ;;  %5215 = vmatprep.mubr.msk.f32.mxu0 %vm5574_vm1, %v5573_v1 }
0x1087   :  { %v5531_v63 = vpop.eup %5530  ;;  %v3433_v0 = vmul.f32 %v5529_v60, %v5513_v7  ;;  %5223 = vmatprep.subr.mxu0 %v5573_v1  ;;  %v2731_v9 = vpop.permute.xlu0 %2730 }
0x1088   :  { %v3434_v3 = vmul.f32 %v5531_v63, %v5515_v38  ;;  %v2729_v5 = vpop.permute.xlu1 %2728 }
0x1089   :  { %5211 = vmatmul.mubr.msk.f32.vlgmr.msra.gmra.mrb[52].mxu1 %vm1489_vm4, %v3433_v0 }
0x108a   :  { %v5533_v6 = vpop.eup %5532  ;;  %5216 = vmatmul.mubr.msk.f32.vlgmr.msra.gmra.mrb[34].mxu0 %vm1489_vm4, %v3434_v3  ;;  %5219 = vmatpush3.msra.mxu1 %v2725_v50 }
0x108b   :  { %v3435_v8 = vmul.f32 %v5533_v6, %v5517_v41  ;;  %5224 = vmatpush3.msra.mxu0 %v2729_v5  ;;  %5220 = vmatprep.mubr.msk.f32.mxu1 %vm5574_vm1, %v5573_v1 }
0x108c   :  { %5228 = vmatprep.subr.mxu1 %v5573_v1  ;;  %5225 = vmatprep.mubr.msk.f32.mxu0 %vm5574_vm1, %v5573_v1 }
0x108d   :  { %5221 = vmatmul.mubr.msk.f32.vlgmr.msra.gmra.mrb[54].mxu1 %vm1489_vm4, %v3435_v8  ;;  %5233 = vmatprep.subr.bf16.mxu0 %v5573_v1 }
0x108e   :  { %v5535_v10 = vpop.eup %5534  ;;  %5229 = vmatpush3.msra.mxu1 %v2731_v9  ;;  %5230 = vmatprep.mubr.msk.f32.mxu1 %vm5574_vm1, %v5573_v1 }
0x108f   :  { %v5537_v11 = vpop.eup %5536  ;;  %v3437_v21 = vmul.f32 %v5535_v10, %v6325_v43  ;;  %5245 = vmatprep.subr.bf16.mxu1 %v5573_v1 }
0x1090   :  { %v3436_v62 = vmul.f32 %v5537_v11, %v6327_v44 }
0x1091   :  { %5231 = vmatmul.mubr.msk.f32.vlgmr.msra.gmra.mrb[56].mxu1 %vm1489_vm4, %v3437_v21 }
0x1092   :  { %5226 = vmatmul.mubr.msk.f32.vlgmr.msra.gmra.mrb[36].mxu0 %vm1489_vm4, %v3436_v62  ;;  %5253 = vmatprep.mubr.msk.bf16.mxu1 %vm5574_vm1, %v5573_v1  ;;  %v5442_v62 = vld [vmem:[%s6532_s11 + $0x20] sm:$0xff]  }
0x1093   :  { %5241 = vmatprep.mubr.msk.bf16.mxu0 %vm5574_vm1, %v5573_v1  ;;  %5234 = vmatpush3.bf16.msra.mxu0 %v5438_v12  ;;  %v5443_v12 = vld [vmem:[%s6532_s11 + $0x28] sm:$0xff]  }
0x1094   :  { %5235 = vmatprep.subr.bf16.mxu0 %v5573_v1  ;;  %5246 = vmatpush3.bf16.msra.mxu1 %v5442_v62 }
0x1095   :  { %5247 = vmatprep.subr.bf16.mxu1 %v5573_v1 }
0x1097   :  { %5236 = vmatpush3.bf16.msra.mxu0 %v5439_v16 }
0x1098   :  { %5237 = vmatprep.subr.bf16.mxu0 %v5573_v1  ;;  %5248 = vmatpush3.bf16.msra.mxu1 %v5443_v12  ;;  %v4842_v12 = vld [vmem:[%s6535_s14 + $0x1] ss:$0 sm:$0xff] }
0x1099   :  { %5249 = vmatprep.subr.bf16.mxu1 %v5573_v1 }
0x109b   :  { %5238 = vmatpush3.bf16.msra.mxu0 %v5440_v18 }
0x109c   :  { %5239 = vmatprep.subr.bf16.mxu0 %v5573_v1 }
0x109f   :  { %5240 = vmatpush3.bf16.msra.mxu0 %v5441_v25 }
0x10a0   :  { %5257 = vmatprep.subr.bf16.mxu0 %v5573_v1 }
0x10fb   :  { %v3580_v13 = vpop.f32.mrb[50].mxu1 }
0x10fc   :  { %v5202_v14 = vpop.f32.mrb[51].mxu1 }
0x10fd   :  { %v5445_v14 = vld [vmem:[%s6532_s11 + $0x38] sm:$0xff]  }
0x1103   :  { %v3507_v22 = vpop.f32.mrb[30].mxu0 }
0x1104   :  { %v5197_v15 = vpop.f32.mrb[31].mxu0 }
0x1158   :  { %v3653_v17 = vpop.f32.mrb[32].mxu0 }
0x1159   :  { %v5207_v20 = vpop.f32.mrb[33].mxu0 }
0x115c   :  { %v3726_v23 = vpop.f32.mrb[52].mxu1 }
0x115d   :  { %v5326_v27 = vpack.i.bf16 %v3726_v23, %v3653_v17  ;;  %v3799_v31 = vpop.f32.mrb[34].mxu0  ;;  %v5212_v32 = vpop.f32.mrb[53].mxu1 }
0x115e   :  { %v5217_v19 = vpop.f32.mrb[35].mxu0 }
0x115f   :  { %5327 = vrot.lane.b32.xlu1 %v5326_v27, %s6555_s20  ;;  %v4800_v27 = vld [vmem:[%s6530_s9 + $0x1] ss:$0 sm:$0xff] }
0x1160   :  { %v3872_v4 = vpop.f32.mrb[54].mxu1 }
0x1161   :  { %v5331_v35 = vpack.i.bf16 %v3872_v4, %v3799_v31  ;;  %v5222_v36 = vpop.f32.mrb[55].mxu1  ;;  %v4801_v4 = vld [vmem:[%s6531_s10 + $0x1] ss:$0 sm:$0xff] }
0x1163   :  { %5332 = vrot.lane.b32.xlu0 %v5331_v35, %s6556_s30  ;;  %s5583_s30 = smov [#allocation3]  }
0x1164   :  { %v4018_v37 = vpop.f32.mrb[56].mxu1 }
0x1165   :  { %v3945_v7 = vpop.f32.mrb[36].mxu0  ;;  %v5232_v38 = vpop.f32.mrb[57].mxu1 }
0x1166   :  { %v5336_v39 = vpack.i.bf16 %v4018_v37, %v3945_v7  ;;  %v5227_v40 = vpop.f32.mrb[37].mxu0  ;;  %v5446_v38 = vld [vmem:[%s6534_s13 + $0x40] sm:$0xff]  }
0x1167   :  { %v5448_v40 = vld [vmem:[%s6534_s13 + $0x50] sm:$0xff]  }
0x1168   :  { %5337 = vrot.lane.b32.xlu1 %v5336_v39, %s6557_s7  ;;  %v5447_v39 = vld [vmem:[%s6534_s13 + $0x48] sm:$0xff]   ;;  %s4611_s7 = sshll.u32 %s5583_s30, 4  ;;  %s4612_s7 = int_to_ptr.vmem [resolvable:$true] %s4611_s7 }
0x1169   :  { %p5553_p1 = scmp.lt.s32.totalorder %s4612_s7, %s4612_s7 }
0x11d1   :  { %v5328_v41 = vpop.permute.xlu1 %5327 }
0x11d2   :  { %v5330_v43 = vunpack.i.h.bf16 %v5328_v41  ;;  %v5329_v44 = vunpack.i.l.bf16 %v5328_v41  ;;  %v5449_v41 = vld [vmem:[%s6534_s13 + $0x58] sm:$0xff]  }
0x11d4   :  { %v4047_v2 = vsel %vm872_vm2, %v3580_v13, %v5330_v43  ;;  %v4046_v48 = vsel %vm872_vm2, %v3507_v22, %v5329_v44  ;;  %v5444_v13 = vld [vmem:[%s6532_s11 + $0x30] sm:$0xff]   ;;  %v5451_v43 = vld [vmem:[%s6534_s13 + $0x68] sm:$0xff]  }
0x11d5   :  { %v5333_v42 = vpop.permute.xlu0 %5332  ;;  %5250 = vmatpush3.bf16.msra.mxu1 %v5444_v13  ;;  %v5452_v44 = vld [vmem:[%s6534_s13 + $0x70] sm:$0xff]  }
0x11d6   :  { %v5335_v45 = vunpack.i.h.bf16 %v5333_v42  ;;  %v5334_v46 = vunpack.i.l.bf16 %v5333_v42  ;;  %5251 = vmatprep.subr.bf16.mxu1 %v5573_v1  ;;  %v5450_v42 = vld [vmem:[%s6534_s13 + $0x60] sm:$0xff]  }
0x11d8   :  { %v4049_v51 = vsel %vm2188_vm5, %v4047_v2, %v5335_v45  ;;  %v4048_v52 = vsel %vm2188_vm5, %v4046_v48, %v5334_v46  ;;  %v5453_v45 = vld [vmem:[%s6534_s13 + $0x78] sm:$0xff]   ;;  %v4811_v46 = vld [vmem:[%s6533_s12 + $0x1] ss:$0 sm:$0xff] }
0x11d9   :  { %5252 = vmatpush3.bf16.msra.mxu1 %v5445_v14 }
0x11da   :  { %v5338_v47 = vpop.permute.xlu1 %5337 }
0x11db   :  { %v5340_v49 = vunpack.i.h.bf16 %v5338_v47  ;;  %v5339_v50 = vunpack.i.l.bf16 %v5338_v47 }
0x11dd   :  { %v4051_v53 = vsel %vm2191_vm6, %v4049_v51, %v5340_v49  ;;  %v4050_v33 = vsel %vm2191_vm6, %v4048_v52, %v5339_v50 }
0x11de   :  { %v4052_v34 = vpack.c.bf16 %v4051_v53, %v4050_v33 }
0x11e0   :  { %5242 = vmatmul.mubr.msk.bf16.vlgmr.msra.gmra.mrb[40].mxu0 %vm685_vm0, %v4052_v34 }
0x11e1   :  { %5273 = vmatprep.mubr.msk.bf16.mxu0 %vm5574_vm1, %v5573_v1  ;;  %5258 = vmatpush3.bf16.msra.mxu0 %v5446_v38 }
0x11e2   :  { %5259 = vmatprep.subr.bf16.mxu0 %v5573_v1 }
0x11e5   :  { %5260 = vmatpush3.bf16.msra.mxu0 %v5447_v39  ;;  %v4845_v39 = vld [vmem:[%s6536_s15] ss:$0 sm:$0xff]  ;;  %s5548_s15 = scalar_lea.vmem %s4612_s7, 32 }
0x11e6   :  { %5261 = vmatprep.subr.bf16.mxu0 %v5573_v1  ;;  %p5549_p0 = scmp.ne.s32.totalorder %s4612_s7, %s5548_s15  ;;  %p5554_p2 = scmp.lt.s32.totalorder %s5548_s15, %s5548_s15 }
0x11e8   :  { %p5555_p3 = por %p5554_p2, %p5553_p1 }
0x11e9   :  { %5262 = vmatpush3.bf16.msra.mxu0 %v5448_v40 }
0x11ea   :  { %5263 = vmatprep.subr.bf16.mxu0 %v5573_v1  ;;  %p5556_p4 = pnand %p5555_p3, %p5549_p0 }
0x11ed   :  { %5264 = vmatpush3.bf16.msra.mxu0 %v5449_v41  ;;  %v4846_v41 = vld [vmem:[%s6537_s16] ss:$0 sm:$0xff] }
0x11ee   :  { %5265 = vmatprep.subr.bf16.mxu0 %v5573_v1 }
0x11f1   :  { %5266 = vmatpush3.bf16.msra.mxu0 %v5450_v42 }
0x11f2   :  { %5267 = vmatprep.subr.bf16.mxu0 %v5573_v1 }
0x11f5   :  { %5268 = vmatpush3.bf16.msra.mxu0 %v5451_v43 }
0x11f6   :  { %5269 = vmatprep.subr.bf16.mxu0 %v5573_v1 }
0x11f9   :  { %5270 = vmatpush3.bf16.msra.mxu0 %v5452_v44 }
0x11fa   :  { %5271 = vmatprep.subr.bf16.mxu0 %v5573_v1 }
0x11fd   :  { %5272 = vmatpush3.bf16.msra.mxu0 %v5453_v45 }
0x12b3   :  { %v4123_v54 = vpop.f32.mrb[40].mxu0 }
0x12b4   :  { %v4130_v28 = vadd.f32 %v4123_v54, %v6171_v24  ;;  %v5243_v26 = vpop.f32.mrb[41].mxu0 }
0x12b5   :  { %v4126_v56 = vpop.f32.mrb[42].mxu0 }
0x12b6   :  { %v6401_v57 = vadd.f32 %v4797_v55, %v4130_v28  ;;  %v4131_v58 = vadd.f32 %v4126_v56, %v6174_v30  ;;  %v5244_v59 = vpop.f32.mrb[43].mxu0 }
0x12b8   :  { %v6404_v60 = vadd.f32 %v4797_v55, %v4131_v58  ;;  %v4146_v63 = vsel %vm685_vm0, %v6401_v57, 0.0 }
0x12b9   :  { %4147 = vadd.xlane.f32.xlu0 %v4146_v63 }
0x12ba   :  { %v4149_v0 = vsel %vm685_vm0, %v6404_v60, 0.0 }
0x12bb   :  { %4150 = vadd.xlane.f32.xlu1 %v4149_v0 }
0x1346   :  { %v4148_v3 = vpop.xlane.xlu0 %4147 }
0x1347   :  { %v4152_v5 = vmul.f32 0.015625, %v4148_v3 }
0x1348   :  { %v4151_v24 = vpop.xlane.xlu1 %4150 }
0x1349   :  { %v4154_v6 = vsub.f32 %v6401_v57, %v4152_v5  ;;  %v4153_v8 = vmul.f32 0.015625, %v4151_v24 }
0x134b   :  { %v4155_v9 = vsub.f32 %v6404_v60, %v4153_v8  ;;  %v4156_v30 = vmul.f32 %v4154_v6, %v4154_v6 }
0x134d   :  { %v4158_v10 = vsel %vm685_vm0, %v4156_v30, 0.0  ;;  %v4157_v11 = vmul.f32 %v4155_v9, %v4155_v9  ;;  %v5582_v30 = vmov 0.0|0.0  }
0x134e   :  { %4159 = vadd.xlane.f32.xlu0 %v4158_v10  ;;  %5296 = vmatprep.subr.bf16.mxu1 %v5582_v30  ;;  %v4413_v10 = vmul.u32 8, %v5894_v61 }
0x134f   :  { %v4161_v21 = vsel %vm685_vm0, %v4157_v11, 0.0 }
0x1350   :  { %v4414_v14 = vadd.s32 4, %v4413_v10 }
0x1352   :  { %4162 = vadd.xlane.f32.xlu0 %v4161_v21  ;;  %vm4415_vm7 = vcmp.eq.s32.totalorder %v5977_v29, %v4414_v14 }
0x1353   :  { %v4843_v61 = vsel %vm4415_vm7, 1.0, %v5573_v1 }
0x13db   :  { %v4160_v22 = vpop.xlane.xlu0 %4159 }
0x13dc   :  { %v4164_v15 = vmul.f32 0.015625, %v4160_v22 }
0x13de   :  { %v4166_v16 = vadd.f32 1e-06, %v4164_v15 }
0x13df   :  { %v4163_v17 = vpop.xlane.xlu0 %4162 }
0x13e0   :  { %5538 = vrsqrt.f32 %v4166_v16  ;;  %v4165_v18 = vmul.f32 0.015625, %v4163_v17 }
0x13e2   :  { %v4167_v20 = vadd.f32 1e-06, %v4165_v18 }
0x13e4   :  { %5540 = vrsqrt.f32 %v4167_v20 }
0x13ea   :  { %v5539_v23 = vpop.eup %5538 }
0x13eb   :  { %v4170_v25 = vmul.f32 %v5539_v23, %v4154_v6 }
0x13ed   :  { %v4178_v32 = vmul.f32 %v4800_v27, %v4170_v25 }
0x13ee   :  { %v5541_v31 = vpop.eup %5540 }
0x13ef   :  { %v4171_v19 = vmul.f32 %v5541_v31, %v4155_v9  ;;  %v4186_v36 = vadd.f32 %v4801_v4, %v4178_v32  ;;  %v5454_v32 = vld [vmem:[%s6538_s17] sm:$0xff]  }
0x13f1   :  { %v4179_v35 = vmul.f32 %v4800_v27, %v4171_v19  ;;  %v5455_v19 = vld [vmem:[%s6538_s17 + $0x8] sm:$0xff]  }
0x13f3   :  { %v4187_v37 = vadd.f32 %v4801_v4, %v4179_v35  ;;  %v5456_v4 = vld [vmem:[%s6538_s17 + $0x10] sm:$0xff]   ;;  %v5457_v35 = vld [vmem:[%s6538_s17 + $0x18] sm:$0xff]  }
0x13f5   :  { %v4188_v7 = vpack.c.bf16 %v4187_v37, %v4186_v36 }
0x13f7   :  { %5254 = vmatmul.mubr.msk.bf16.vlgmr.msra.gmra.mrb[60].mxu1 %vm685_vm0, %v4188_v7 }
0x13f8   :  { %5281 = vmatprep.mubr.msk.f32.mxu1 %vm5574_vm1, %v5573_v1 }
0x14ca   :  { %v4267_v47 = vpop.f32.mrb[60].mxu1 }
0x14cb   :  { %v4268_v2 = vadd.f32 %v4811_v46, %v4267_v47  ;;  %v5255_v48 = vpop.f32.mrb[61].mxu1 }
0x14cc   :  { %v4270_v49 = vpop.f32.mrb[62].mxu1 }
0x14cd   :  { %v4276_v50 = vmul.f32 0.044715, %v4268_v2  ;;  %v4271_v51 = vadd.f32 %v4811_v46, %v4270_v49  ;;  %v5256_v52 = vpop.f32.mrb[63].mxu1  ;;  %v4274_v3 = vmul.f32 0.5, %v4268_v2 }
0x14cf   :  { %v4278_v53 = vmul.f32 %v4276_v50, %v4268_v2  ;;  %v4277_v33 = vmul.f32 0.044715, %v4271_v51  ;;  %v4275_v5 = vmul.f32 0.5, %v4271_v51 }
0x14d1   :  { %v4280_v34 = vmul.f32 %v4278_v53, %v4268_v2  ;;  %v4279_v54 = vmul.f32 %v4277_v33, %v4271_v51 }
0x14d3   :  { %v4282_v55 = vadd.f32 %v4280_v34, %v4268_v2  ;;  %v4281_v28 = vmul.f32 %v4279_v54, %v4271_v51 }
0x14d5   :  { %v4284_v26 = vmul.f32 0.7978846, %v4282_v55  ;;  %v4283_v56 = vadd.f32 %v4281_v28, %v4271_v51 }
0x14d7   :  { %5542 = vtanh.f32 %v4284_v26  ;;  %v4285_v58 = vmul.f32 0.7978846, %v4283_v56 }
0x14d9   :  { %5544 = vtanh.f32 %v4285_v58 }
0x14e1   :  { %v5543_v59 = vpop.eup %5542 }
0x14e2   :  { %v4288_v63 = vadd.f32 1.0, %v5543_v59 }
0x14e3   :  { %v5545_v0 = vpop.eup %5544 }
0x14e4   :  { %v4289_v24 = vadd.f32 1.0, %v5545_v0  ;;  %v4290_v6 = vmul.f32 %v4288_v63, %v4274_v3 }
0x14e6   :  { %v4291_v8 = vmul.f32 %v4289_v24, %v4275_v5 }
0x14e8   :  { %v4292_v9 = vpack.c.bf16 %v4291_v8, %v4290_v6 }
0x14ea   :  { %5274 = vmatmul.mubr.bf16.vlgmr.msra.gmra.mrb[44].mxu0 %v4292_v9 }
0x15bd   :  { %v4392_v11 = vpop.f32.mrb[44].mxu0 }
0x15be   :  { %v4399_v21 = vadd.f32 %v4392_v11, %v6401_v57  ;;  %v5275_v62 = vpop.f32.mrb[45].mxu0 }
0x15bf   :  { %v4395_v13 = vpop.f32.mrb[46].mxu0 }
0x15c0   :  { %v4400_v22 = vadd.f32 %v4395_v13, %v6404_v60  ;;  %v5276_v15 = vpop.f32.mrb[47].mxu0  ;;  %v4409_v16 = vadd.f32 %v4842_v12, %v4399_v21 }
0x15c2   :  { %v4410_v17 = vadd.f32 %v4842_v12, %v4400_v22 }
0x15c4   :  { %v5297_v18 = vpack.c.bf16 %v4410_v17, %v4409_v16 }
0x15c6   :  { %5298 = vmatpush3.bf16.msra.mxu1 %v5297_v18 }
0x15c7   :  { %5284 = vmatprep.subr.bf16.mxu1 %v5573_v1 }
0x15c9   :  { %5282 = vmatmul.mubr.msk.f32.vlgmr.msra.gmra.mrb[58].mxu1 %vm872_vm2, %v4843_v61 }
0x15ca   :  { %5292 = vmatprep.mubr.msk.bf16.mxu1 %vm5574_vm1, %v5573_v1  ;;  %5285 = vmatpush3.bf16.msra.mxu1 %v5454_v32 }
0x15cb   :  { %5286 = vmatprep.subr.bf16.mxu1 %v5573_v1 }
0x15ce   :  { %5287 = vmatpush3.bf16.msra.mxu1 %v5455_v19 }
0x15cf   :  { %5288 = vmatprep.subr.bf16.mxu1 %v5573_v1 }
0x15d2   :  { %5289 = vmatpush3.bf16.msra.mxu1 %v5456_v4 }
0x15d3   :  { %5290 = vmatprep.subr.bf16.mxu1 %v5573_v1  ;;  %v4847_v1 = vld [vmem:[%s6539_s18] ss:$0 sm:$0xff] }
0x15d6   :  { %5291 = vmatpush3.bf16.msra.mxu1 %v5457_v35 }
0x169c   :  { %v4487_v57 = vpop.f32.mrb[58].mxu1 }
0x169d   :  { %v4494_v20 = vsel %vm4493_vm8, %v4487_v57, 0.0  ;;  %v5283_v60 = vpop.f32.mrb[59].mxu1 }
0x169e   :  { %4495 = vadd.xlane.f32.xlu0 %v4494_v20 }
0x172b   :  { %v4496_v23 = vpop.xlane.xlu0 %4495 }
0x172c   :  { %v4497_v25 = vmul.f32 0.015625, %v4496_v23 }
0x172e   :  { %v4498_v27 = vsub.f32 %v4487_v57, %v4497_v25 }
0x1730   :  { %v4499_v29 = vmul.f32 %v4498_v27, %v4498_v27 }
0x1732   :  { %v4500_v31 = vsel %vm4493_vm8, %v4499_v29, 0.0 }
0x1733   :  { %4501 = vadd.xlane.f32.xlu1 %v4500_v31 }
0x17c0   :  { %v4502_v36 = vpop.xlane.xlu1 %4501 }
0x17c1   :  { %v4503_v37 = vmul.f32 0.015625, %v4502_v36 }
0x17c3   :  { %v4504_v7 = vadd.f32 1e-06, %v4503_v37 }
0x17c5   :  { %5546 = vrsqrt.f32 %v4504_v7 }
0x17cf   :  { %v5547_v38 = vpop.eup %5546 }
0x17d0   :  { %v4506_v40 = vmul.f32 %v5547_v38, %v4498_v27 }
0x17d2   :  { %v4513_v42 = vmul.f32 %v4845_v39, %v4506_v40 }
0x17d4   :  { %v4520_v43 = vadd.f32 %v4846_v41, %v4513_v42 }
0x17d6   :  { %v4521_v44 = vpack.c.bf16 %v4520_v43, %v4520_v43 }
0x17d8   :  { %5293 = vmatmul.mubr.msk.bf16.vlgmr.msra.gmra.mrb[64].mxu1 %vm685_vm0, %v4521_v44 }
0x18ab   :  { %v4598_v45 = vpop.f32.mrb[64].mxu1 }
0x18ac   :  { %v4599_v46 = vadd.f32 %v4847_v1, %v4598_v45  ;;  %v5294_v47 = vpop.f32.mrb[65].mxu1 }
0x18ad   :  { %v4601_v2 = vpop.f32.mrb[66].mxu1 }
0x18ae   :  { %4604 = vst [vmem:[#allocation3] sm:$0x3] %v4599_v46  ;;  %v5295_v48 = vpop.f32.mrb[67].mxu1 }
0x18af   :  { %5559 = shalt.err (!%p5556_p4)
}
0x18b0   :  { %s5560_s18 = scalar_lea.hbm %s6540_s19, 32 }
0x18b1   :  { %p5561_p5 = scmp.ne.s32.totalorder %s6540_s19, %s5560_s18  ;;  %p5564_p6 = scmp.lt.u32.totalorder %s5560_s18, %s6540_s19 }
0x18b3   :  { %p5566_p7 = pnand %p5564_p6, %p5561_p5 }
0x18b5   :  { %5569 = shalt.err (!%p5566_p7)
}
0x18b6   :  { %4614 = dma.vmem_to_hbm [thread:$0]  %s4612_s7, 32, %s6540_s19, [#allocation4]  }
0x18b7   :  { %5570 = dma.done.wait [#allocation4], 32  }
0x18b8   :  { %5571 = vsyncadd [#allocation4], 4294967264 }
0x18b9   :  { %4618 = vsyncpa [#allocation4], 1 }

</bundles_post_ra>
